<compile_context>
chip_gen: v5e
topology: v5e:2x2
jax: 0.10.0
libtpu: 0.0.40
codegen_flags: <defaults>
</compile_context>

<pallas_src>
import jax
import jax.numpy as jnp
from jax.experimental import pallas as pl
from jax.experimental.pallas import tpu as pltpu

# ----------------------------- small config ---------------------------------
B    = 2      # batch
CIN  = 4      # input image channels
HH   = 16     # spatial H
WW   = 16     # spatial W
FEAT = 32     # features_dim   (512 in the original, scaled down)
HID  = 64     # proj_hidden_dim (4096 in the original, scaled down)
OUT  = 128    # proj_output_dim (4096 in the original, scaled down)
EPS  = 1e-5   # BatchNorm1d eps (PyTorch default)

KCOL = 9 * CIN          # real im2col contraction dim (3*3*CIN = 36)
KPAD = 128              # lane-padded contraction (36 taps + 1 bias col + zeros)
FPAD = 128              # lane-padded FEAT
HPAD = 128              # lane-padded HID
MPAD = 8                # sublane-padded stacked batch (2*B = 4 real rows)
NPIX = B * HH * WW      # im2col rows per branch (= 512)


# ------------------------- single fused kernel -------------------------------
def _fused_kernel(patch_ref, convw_ref, pools_ref, fcw_ref, fcb_ref,
                  w1_ref, b1_ref, g1_ref, be1_ref,
                  w2_ref, b2_ref, g2_ref, be2_ref,
                  w3_ref, b3_ref, out_ref):
    """Both branches + shared projector in one invocation.

    patch_ref : (2*NPIX, KPAD)  im2col slabs, branch-major rows; col KCOL == 1.0
    convw_ref : (2, KPAD, FPAD) per-branch conv weights, bias folded into row KCOL
    pools_ref : (2, MPAD, NPIX) per-branch GAP matrices (1/HW folded in)
    fcw_ref   : (2, FPAD, FPAD) per-branch backbone.fc weights (in, out)
    fcb_ref   : (2, 1, FPAD)
    w*/b*/g*/be* : shared projector Linear / BatchNorm params (lane-padded)
    out_ref   : (MPAD, OUT)     rows 0..B-1 = z1, rows B..2B-1 = z2, rest pad
    """
    f32 = jnp.float32

    # branch row masks over the sublane-padded stacked batch axis
    row = jax.lax.broadcasted_iota(jnp.int32, (MPAD, 1), 0)
    m1 = (row < B).astype(f32)                       # rows of branch 1
    m2 = ((row >= B) & (row < 2 * B)).astype(f32)    # rows of branch 2

    # --- stems: conv3x3(stride1,pad1) as one im2col matmul per branch -------
    # (conv bias rides the constant-1 column of the patch slab)
    conv1 = jnp.maximum(
        jnp.dot(patch_ref[pl.ds(0, NPIX), :], convw_ref[0],
                preferred_element_type=f32), 0.0)                 # (NPIX, FPAD)
    conv2 = jnp.maximum(
        jnp.dot(patch_ref[pl.ds(NPIX, NPIX), :], convw_ref[1],
                preferred_element_type=f32), 0.0)                 # (NPIX, FPAD)

    # global average pool on the MXU; branch-1 features land in rows 0..B-1,
    # branch-2 features in rows B..2B-1, pad rows stay zero.
    feats = (jnp.dot(pools_ref[0], conv1, preferred_element_type=f32) +
             jnp.dot(pools_ref[1], conv2, preferred_element_type=f32))  # (MPAD, FPAD)

    # --- per-branch backbone.fc (row-masked so each branch uses its weights) --
    x = (jnp.dot(feats * m1, fcw_ref[0], preferred_element_type=f32) +
         jnp.dot(feats * m2, fcw_ref[1], preferred_element_type=f32) +
         m1 * fcb_ref[0] + m2 * fcb_ref[1])                              # (MPAD, FPAD)

    # --- shared projector, run ONCE on the stacked activations;
    #     BatchNorm (train mode) stats computed strictly PER BRANCH, in f32,
    #     with the centered two-pass variance. ---
    inv_b = 1.0 / float(B)

    def lin_bn_relu(h, w_ref, b_ref, g_ref, be_ref):
        h = jnp.dot(h, w_ref[...], preferred_element_type=f32) + b_ref[...]
        mu1 = jnp.sum(h * m1, axis=0, keepdims=True) * inv_b
        mu2 = jnp.sum(h * m2, axis=0, keepdims=True) * inv_b
        hc = h - (m1 * mu1 + m2 * mu2)                  # center per branch
        v1 = jnp.sum(hc * hc * m1, axis=0, keepdims=True) * inv_b
        v2 = jnp.sum(hc * hc * m2, axis=0, keepdims=True) * inv_b
        inv = m1 * jax.lax.rsqrt(v1 + EPS) + m2 * jax.lax.rsqrt(v2 + EPS)
        return jnp.maximum(hc * inv * g_ref[...] + be_ref[...], 0.0)

    h = lin_bn_relu(x, w1_ref, b1_ref, g1_ref, be1_ref)
    h = lin_bn_relu(h, w2_ref, b2_ref, g2_ref, be2_ref)

    # projector output layer: Linear(proj_hidden_dim, proj_output_dim)
    z = jnp.dot(h, w3_ref[...], preferred_element_type=f32) + b3_ref[...]  # (MPAD, OUT)
    out_ref[...] = z.astype(out_ref.dtype)


# ------------------------------ helpers --------------------------------------
def _pad2(a, rows, cols):
    """Zero-pad a 2-D array up to (rows, cols)."""
    out = jnp.zeros((rows, cols), jnp.float32)
    return out.at[: a.shape[0], : a.shape[1]].set(a)


# ------------------------------ full forward ---------------------------------
def vicreg_cnn2_forward(timage_1, timage_2, p):
    """timage_* : (B, CIN, H, W)  NCHW, like the PyTorch reference."""
    f32 = jnp.float32

    # ---- im2col slab for both branches (branch-major rows), built in XLA ----
    x = jnp.stack([timage_1, timage_2], axis=0)                  # (2,B,CIN,H,W)
    x = jnp.transpose(x, (0, 1, 3, 4, 2))                        # (2,B,H,W,CIN)
    xpad = jnp.pad(x, ((0, 0), (0, 0), (1, 1), (1, 1), (0, 0)))  # (2,B,H+2,W+2,CIN)
    taps = [xpad[:, :, ky:ky + HH, kx:kx + WW, :]
            for ky in range(3) for kx in range(3)]               # 9 x (2,B,H,W,CIN)
    patches = jnp.stack(taps, axis=4).reshape(2 * NPIX, KCOL)    # (1024, 36)
    # lane-pad K to 128; column KCOL is a constant 1 that carries the conv bias
    patches = jnp.concatenate(
        [patches, jnp.ones((2 * NPIX, 1), f32),
         jnp.zeros((2 * NPIX, KPAD - KCOL - 1), f32)], axis=1)   # (1024, 128)

    # ---- per-branch conv weights (HWIO flattened), bias folded into row KCOL --
    def pack_conv(w, b):
        wf = _pad2(w.reshape(KCOL, FEAT), KPAD, FPAD)
        return wf.at[KCOL, :FEAT].set(b.reshape(FEAT))
    convw = jnp.stack([pack_conv(p["conv1_w"], p["conv1_b"]),
                       pack_conv(p["conv2_w"], p["conv2_b"])])   # (2, 128, 128)

    # ---- GAP pooling matrices (1/HW folded in, zero pad rows) ----
    pool_block = jnp.repeat(jnp.eye(B, dtype=f32), HH * WW, axis=1) / float(HH * WW)
    pool1 = jnp.zeros((MPAD, NPIX), f32).at[0:B].set(pool_block)        # branch 1 rows
    pool2 = jnp.zeros((MPAD, NPIX), f32).at[B:2 * B].set(pool_block)    # branch 2 rows
    pools = jnp.stack([pool1, pool2])                            # (2, 8, 512)

    # ---- per-branch backbone.fc, lane-padded ----
    fcw = jnp.stack([_pad2(p["fc1_w"], FPAD, FPAD), _pad2(p["fc2_w"], FPAD, FPAD)])
    fcb = jnp.stack([_pad2(p["fc1_b"], 1, FPAD), _pad2(p["fc2_b"], 1, FPAD)])

    # ---- shared projector, lane-padded (zero pads keep padded cols exactly 0) --
    w1 = _pad2(p["proj_w1"], FPAD, HPAD); b1 = _pad2(p["proj_b1"], 1, HPAD)
    g1 = _pad2(p["bn1_g"], 1, HPAD);      be1 = _pad2(p["bn1_b"], 1, HPAD)
    w2 = _pad2(p["proj_w2"], HPAD, HPAD); b2 = _pad2(p["proj_b2"], 1, HPAD)
    g2 = _pad2(p["bn2_g"], 1, HPAD);      be2 = _pad2(p["bn2_b"], 1, HPAD)
    w3 = _pad2(p["proj_w3"], HPAD, OUT);  b3 = _pad2(p["proj_b3"], 1, OUT)

    # ---- cost hint so XLA can schedule the custom call against wrapper ops ----
    mm = lambda m, k, n: 2 * m * k * n
    flops = (2 * mm(NPIX, KPAD, FPAD)        # conv, both branches
             + 2 * mm(MPAD, NPIX, FPAD)      # GAP pooling matmuls
             + 2 * mm(MPAD, FPAD, FPAD)      # per-branch fc
             + mm(MPAD, FPAD, HPAD) + mm(MPAD, HPAD, HPAD) + mm(MPAD, HPAD, OUT))
    bytes_accessed = 4 * (patches.size + convw.size + pools.size + fcw.size
                          + fcb.size + w1.size + w2.size + w3.size
                          + 7 * HPAD + OUT + MPAD * OUT)
    cost = pl.CostEstimate(flops=flops, transcendentals=4 * HPAD,
                           bytes_accessed=bytes_accessed)

    # ---- single fused pallas_call, no grid: all operands resident in VMEM ----
    raw = pl.pallas_call(
        _fused_kernel,
        out_shape=jax.ShapeDtypeStruct((MPAD, OUT), f32),
        cost_estimate=cost,
    )(patches, convw, pools, fcw, fcb,
      w1, b1, g1, be1, w2, b2, g2, be2, w3, b3)

    # rows 0..B-1 are z1, rows B..2B-1 are z2 -> torch.cat((z1, z2), dim=1)
    return jnp.concatenate([raw[0:B, :], raw[B:2 * B, :]], axis=1)   # (B, 2*OUT)


# --------------------------- deterministic params -----------------------------
def init_params(key):
    ks = jax.random.split(key, 16)
    u = lambda k, shp, s: (jax.random.uniform(k, shp, jnp.float32, -1.0, 1.0) * s)
    p = {
        # per-branch conv stems (stand-in CNN feature extractors)
        "conv1_w": u(ks[0], (3, 3, CIN, FEAT), 0.2),
        "conv1_b": u(ks[1], (1, FEAT), 0.1),
        "conv2_w": u(ks[2], (3, 3, CIN, FEAT), 0.2),
        "conv2_b": u(ks[3], (1, FEAT), 0.1),
        # per-branch backbone.fc = Linear(features_dim, features_dim); stored (in, out)
        "fc1_w": u(ks[4], (FEAT, FEAT), 0.15),
        "fc1_b": u(ks[5], (1, FEAT), 0.05),
        "fc2_w": u(ks[6], (FEAT, FEAT), 0.15),
        "fc2_b": u(ks[7], (1, FEAT), 0.05),
        # shared projector
        "proj_w1": u(ks[8], (FEAT, HID), 0.15),
        "proj_b1": u(ks[9], (1, HID), 0.05),
        "bn1_g": jnp.ones((1, HID), jnp.float32),   # PyTorch BN default init
        "bn1_b": jnp.zeros((1, HID), jnp.float32),
        "proj_w2": u(ks[10], (HID, HID), 0.1),
        "proj_b2": u(ks[11], (1, HID), 0.05),
        "bn2_g": jnp.ones((1, HID), jnp.float32),
        "bn2_b": jnp.zeros((1, HID), jnp.float32),
        "proj_w3": u(ks[12], (HID, OUT), 0.1),
        "proj_b3": u(ks[13], (1, OUT), 0.05),
    }
    return p


if __name__ == "__main__":
    key = jax.random.PRNGKey(0)
    k1, k2, kp = jax.random.split(key, 3)
    timage_1 = jax.random.normal(k1, (B, CIN, HH, WW), jnp.float32)
    timage_2 = jax.random.normal(k2, (B, CIN, HH, WW), jnp.float32)
    params = init_params(kp)

    out = jax.jit(vicreg_cnn2_forward)(timage_1, timage_2, params)
    out = jax.block_until_ready(out)

    assert out.shape == (B, 2 * OUT), out.shape
    assert bool(jnp.all(jnp.isfinite(out)))
    print("KERNEL_OK")
</pallas_src>

<mosaic_0001>
module attributes {stable_mosaic.version = 11 : i64} {
  func.func @_fused_kernel(%arg0: memref<1024x128xf32, #tpu.memory_space<vmem>>, %arg1: memref<2x128x128xf32, #tpu.memory_space<vmem>>, %arg2: memref<2x8x512xf32, #tpu.memory_space<vmem>>, %arg3: memref<2x128x128xf32, #tpu.memory_space<vmem>>, %arg4: memref<2x1x128xf32, #tpu.memory_space<vmem>>, %arg5: memref<128x128xf32, #tpu.memory_space<vmem>>, %arg6: memref<1x128xf32, #tpu.memory_space<vmem>>, %arg7: memref<1x128xf32, #tpu.memory_space<vmem>>, %arg8: memref<1x128xf32, #tpu.memory_space<vmem>>, %arg9: memref<128x128xf32, #tpu.memory_space<vmem>>, %arg10: memref<1x128xf32, #tpu.memory_space<vmem>>, %arg11: memref<1x128xf32, #tpu.memory_space<vmem>>, %arg12: memref<1x128xf32, #tpu.memory_space<vmem>>, %arg13: memref<128x128xf32, #tpu.memory_space<vmem>>, %arg14: memref<1x128xf32, #tpu.memory_space<vmem>>, %arg15: memref<8x128xf32, #tpu.memory_space<vmem>>) attributes {dimension_semantics = [], scalar_prefetch = 0 : i64, scratch_operands = 0 : i64, tpu.core_type = #tpu.core_type<tc>} {
    %0 = tpu.iota {dimensions = array<i32: 0>} : vector<8x1xi32>
    %c2_i32 = arith.constant 2 : i32
    %1 = vector.broadcast %c2_i32 : i32 to vector<8x1xi32>
    %2 = arith.cmpi slt, %0, %1 : vector<8x1xi32>
    %3 = arith.extui %2 : vector<8x1xi1> to vector<8x1xi32>
    %4 = arith.sitofp %3 : vector<8x1xi32> to vector<8x1xf32>
    %c2_i32_0 = arith.constant 2 : i32
    %5 = vector.broadcast %c2_i32_0 : i32 to vector<8x1xi32>
    %6 = arith.cmpi sge, %0, %5 : vector<8x1xi32>
    %c4_i32 = arith.constant 4 : i32
    %7 = vector.broadcast %c4_i32 : i32 to vector<8x1xi32>
    %8 = arith.cmpi slt, %0, %7 : vector<8x1xi32>
    %9 = arith.andi %6, %8 : vector<8x1xi1>
    %10 = arith.extui %9 : vector<8x1xi1> to vector<8x1xi32>
    %11 = arith.sitofp %10 : vector<8x1xi32> to vector<8x1xf32>
    %c0 = arith.constant 0 : index
    %c0_1 = arith.constant 0 : index
    %12 = vector.load %arg0[%c0, %c0_1] : memref<1024x128xf32, #tpu.memory_space<vmem>>, vector<512x128xf32>
    %c0_2 = arith.constant 0 : index
    %c0_3 = arith.constant 0 : index
    %c0_4 = arith.constant 0 : index
    %13 = vector.load %arg1[%c0_2, %c0_3, %c0_4] : memref<2x128x128xf32, #tpu.memory_space<vmem>>, vector<1x128x128xf32>
    %14 = vector.shape_cast %13 : vector<1x128x128xf32> to vector<128x128xf32>
    %cst = arith.constant dense<0.000000e+00> : vector<512x128xf32>
    %15 = tpu.matmul %12, %14, %cst {dimension_numbers = #tpu.dot_dimension_numbers<[1], [0], [0], [1], [0, 0, 1, 1], [], []>} : vector<512x128xf32>, vector<128x128xf32>, vector<512x128xf32> -> vector<512x128xf32>
    %cst_5 = arith.constant 0.000000e+00 : f32
    %16 = vector.broadcast %cst_5 : f32 to vector<512x128xf32>
    %17 = arith.maximumf %15, %16 : vector<512x128xf32>
    %c512 = arith.constant 512 : index
    %c0_6 = arith.constant 0 : index
    %18 = vector.load %arg0[%c512, %c0_6] : memref<1024x128xf32, #tpu.memory_space<vmem>>, vector<512x128xf32>
    %c1 = arith.constant 1 : index
    %c0_7 = arith.constant 0 : index
    %c0_8 = arith.constant 0 : index
    %19 = vector.load %arg1[%c1, %c0_7, %c0_8] : memref<2x128x128xf32, #tpu.memory_space<vmem>>, vector<1x128x128xf32>
    %20 = vector.shape_cast %19 : vector<1x128x128xf32> to vector<128x128xf32>
    %cst_9 = arith.constant dense<0.000000e+00> : vector<512x128xf32>
    %21 = tpu.matmul %18, %20, %cst_9 {dimension_numbers = #tpu.dot_dimension_numbers<[1], [0], [0], [1], [0, 0, 1, 1], [], []>} : vector<512x128xf32>, vector<128x128xf32>, vector<512x128xf32> -> vector<512x128xf32>
    %cst_10 = arith.constant 0.000000e+00 : f32
    %22 = vector.broadcast %cst_10 : f32 to vector<512x128xf32>
    %23 = arith.maximumf %21, %22 : vector<512x128xf32>
    %c0_11 = arith.constant 0 : index
    %c0_12 = arith.constant 0 : index
    %c0_13 = arith.constant 0 : index
    %24 = vector.load %arg2[%c0_11, %c0_12, %c0_13] : memref<2x8x512xf32, #tpu.memory_space<vmem>>, vector<1x8x512xf32>
    %25 = vector.shape_cast %24 : vector<1x8x512xf32> to vector<8x512xf32>
    %cst_14 = arith.constant dense<0.000000e+00> : vector<8x128xf32>
    %26 = tpu.matmul %25, %17, %cst_14 {dimension_numbers = #tpu.dot_dimension_numbers<[1], [0], [0], [1], [0, 0, 1, 1], [], []>} : vector<8x512xf32>, vector<512x128xf32>, vector<8x128xf32> -> vector<8x128xf32>
    %c1_15 = arith.constant 1 : index
    %c0_16 = arith.constant 0 : index
    %c0_17 = arith.constant 0 : index
    %27 = vector.load %arg2[%c1_15, %c0_16, %c0_17] : memref<2x8x512xf32, #tpu.memory_space<vmem>>, vector<1x8x512xf32>
    %28 = vector.shape_cast %27 : vector<1x8x512xf32> to vector<8x512xf32>
    %cst_18 = arith.constant dense<0.000000e+00> : vector<8x128xf32>
    %29 = tpu.matmul %28, %23, %cst_18 {dimension_numbers = #tpu.dot_dimension_numbers<[1], [0], [0], [1], [0, 0, 1, 1], [], []>} : vector<8x512xf32>, vector<512x128xf32>, vector<8x128xf32> -> vector<8x128xf32>
    %30 = arith.addf %26, %29 : vector<8x128xf32>
    %31 = vector.broadcast %4 : vector<8x1xf32> to vector<8x128xf32>
    %32 = arith.mulf %30, %31 : vector<8x128xf32>
    %c0_19 = arith.constant 0 : index
    %c0_20 = arith.constant 0 : index
    %c0_21 = arith.constant 0 : index
    %33 = vector.load %arg3[%c0_19, %c0_20, %c0_21] : memref<2x128x128xf32, #tpu.memory_space<vmem>>, vector<1x128x128xf32>
    %34 = vector.shape_cast %33 : vector<1x128x128xf32> to vector<128x128xf32>
    %cst_22 = arith.constant dense<0.000000e+00> : vector<8x128xf32>
    %35 = tpu.matmul %32, %34, %cst_22 {dimension_numbers = #tpu.dot_dimension_numbers<[1], [0], [0], [1], [0, 0, 1, 1], [], []>} : vector<8x128xf32>, vector<128x128xf32>, vector<8x128xf32> -> vector<8x128xf32>
    %36 = vector.broadcast %11 : vector<8x1xf32> to vector<8x128xf32>
    %37 = arith.mulf %30, %36 : vector<8x128xf32>
    %c1_23 = arith.constant 1 : index
    %c0_24 = arith.constant 0 : index
    %c0_25 = arith.constant 0 : index
    %38 = vector.load %arg3[%c1_23, %c0_24, %c0_25] : memref<2x128x128xf32, #tpu.memory_space<vmem>>, vector<1x128x128xf32>
    %39 = vector.shape_cast %38 : vector<1x128x128xf32> to vector<128x128xf32>
    %cst_26 = arith.constant dense<0.000000e+00> : vector<8x128xf32>
    %40 = tpu.matmul %37, %39, %cst_26 {dimension_numbers = #tpu.dot_dimension_numbers<[1], [0], [0], [1], [0, 0, 1, 1], [], []>} : vector<8x128xf32>, vector<128x128xf32>, vector<8x128xf32> -> vector<8x128xf32>
    %41 = arith.addf %35, %40 : vector<8x128xf32>
    %c0_27 = arith.constant 0 : index
    %c0_28 = arith.constant 0 : index
    %c0_29 = arith.constant 0 : index
    %42 = vector.load %arg4[%c0_27, %c0_28, %c0_29] : memref<2x1x128xf32, #tpu.memory_space<vmem>>, vector<1x1x128xf32>
    %43 = vector.shape_cast %42 : vector<1x1x128xf32> to vector<1x128xf32>
    %44 = vector.broadcast %4 : vector<8x1xf32> to vector<8x128xf32>
    %45 = vector.broadcast %43 : vector<1x128xf32> to vector<8x128xf32>
    %46 = arith.mulf %44, %45 : vector<8x128xf32>
    %47 = arith.addf %41, %46 : vector<8x128xf32>
    %c1_30 = arith.constant 1 : index
    %c0_31 = arith.constant 0 : index
    %c0_32 = arith.constant 0 : index
    %48 = vector.load %arg4[%c1_30, %c0_31, %c0_32] : memref<2x1x128xf32, #tpu.memory_space<vmem>>, vector<1x1x128xf32>
    %49 = vector.shape_cast %48 : vector<1x1x128xf32> to vector<1x128xf32>
    %50 = vector.broadcast %11 : vector<8x1xf32> to vector<8x128xf32>
    %51 = vector.broadcast %49 : vector<1x128xf32> to vector<8x128xf32>
    %52 = arith.mulf %50, %51 : vector<8x128xf32>
    %53 = arith.addf %47, %52 : vector<8x128xf32>
    %c0_33 = arith.constant 0 : index
    %c0_34 = arith.constant 0 : index
    %54 = vector.load %arg5[%c0_33, %c0_34] : memref<128x128xf32, #tpu.memory_space<vmem>>, vector<128x128xf32>
    %cst_35 = arith.constant dense<0.000000e+00> : vector<8x128xf32>
    %55 = tpu.matmul %53, %54, %cst_35 {dimension_numbers = #tpu.dot_dimension_numbers<[1], [0], [0], [1], [0, 0, 1, 1], [], []>} : vector<8x128xf32>, vector<128x128xf32>, vector<8x128xf32> -> vector<8x128xf32>
    %c0_36 = arith.constant 0 : index
    %c0_37 = arith.constant 0 : index
    %56 = vector.load %arg6[%c0_36, %c0_37] : memref<1x128xf32, #tpu.memory_space<vmem>>, vector<1x128xf32>
    %57 = vector.broadcast %56 : vector<1x128xf32> to vector<8x128xf32>
    %58 = arith.addf %55, %57 : vector<8x128xf32>
    %59 = vector.broadcast %4 : vector<8x1xf32> to vector<8x128xf32>
    %60 = arith.mulf %58, %59 : vector<8x128xf32>
    %cst_38 = arith.constant dense<0.000000e+00> : vector<128xf32>
    %61 = vector.multi_reduction <add>, %60, %cst_38 [0] : vector<8x128xf32> to vector<128xf32>
    %62 = vector.shape_cast %61 : vector<128xf32> to vector<1x128xf32>
    %cst_39 = arith.constant 5.000000e-01 : f32
    %63 = vector.broadcast %cst_39 : f32 to vector<1x128xf32>
    %64 = arith.mulf %62, %63 : vector<1x128xf32>
    %65 = vector.broadcast %11 : vector<8x1xf32> to vector<8x128xf32>
    %66 = arith.mulf %58, %65 : vector<8x128xf32>
    %cst_40 = arith.constant dense<0.000000e+00> : vector<128xf32>
    %67 = vector.multi_reduction <add>, %66, %cst_40 [0] : vector<8x128xf32> to vector<128xf32>
    %68 = vector.shape_cast %67 : vector<128xf32> to vector<1x128xf32>
    %cst_41 = arith.constant 5.000000e-01 : f32
    %69 = vector.broadcast %cst_41 : f32 to vector<1x128xf32>
    %70 = arith.mulf %68, %69 : vector<1x128xf32>
    %71 = vector.broadcast %4 : vector<8x1xf32> to vector<8x128xf32>
    %72 = vector.broadcast %64 : vector<1x128xf32> to vector<8x128xf32>
    %73 = arith.mulf %71, %72 : vector<8x128xf32>
    %74 = vector.broadcast %11 : vector<8x1xf32> to vector<8x128xf32>
    %75 = vector.broadcast %70 : vector<1x128xf32> to vector<8x128xf32>
    %76 = arith.mulf %74, %75 : vector<8x128xf32>
    %77 = arith.addf %73, %76 : vector<8x128xf32>
    %78 = arith.subf %58, %77 : vector<8x128xf32>
    %79 = arith.mulf %78, %78 : vector<8x128xf32>
    %80 = vector.broadcast %4 : vector<8x1xf32> to vector<8x128xf32>
    %81 = arith.mulf %79, %80 : vector<8x128xf32>
    %cst_42 = arith.constant dense<0.000000e+00> : vector<128xf32>
    %82 = vector.multi_reduction <add>, %81, %cst_42 [0] : vector<8x128xf32> to vector<128xf32>
    %83 = vector.shape_cast %82 : vector<128xf32> to vector<1x128xf32>
    %cst_43 = arith.constant 5.000000e-01 : f32
    %84 = vector.broadcast %cst_43 : f32 to vector<1x128xf32>
    %85 = arith.mulf %83, %84 : vector<1x128xf32>
    %86 = arith.mulf %78, %78 : vector<8x128xf32>
    %87 = vector.broadcast %11 : vector<8x1xf32> to vector<8x128xf32>
    %88 = arith.mulf %86, %87 : vector<8x128xf32>
    %cst_44 = arith.constant dense<0.000000e+00> : vector<128xf32>
    %89 = vector.multi_reduction <add>, %88, %cst_44 [0] : vector<8x128xf32> to vector<128xf32>
    %90 = vector.shape_cast %89 : vector<128xf32> to vector<1x128xf32>
    %cst_45 = arith.constant 5.000000e-01 : f32
    %91 = vector.broadcast %cst_45 : f32 to vector<1x128xf32>
    %92 = arith.mulf %90, %91 : vector<1x128xf32>
    %cst_46 = arith.constant 9.99999974E-6 : f32
    %93 = vector.broadcast %cst_46 : f32 to vector<1x128xf32>
    %94 = arith.addf %85, %93 : vector<1x128xf32>
    %95 = math.rsqrt %94 : vector<1x128xf32>
    %96 = vector.broadcast %4 : vector<8x1xf32> to vector<8x128xf32>
    %97 = vector.broadcast %95 : vector<1x128xf32> to vector<8x128xf32>
    %98 = arith.mulf %96, %97 : vector<8x128xf32>
    %cst_47 = arith.constant 9.99999974E-6 : f32
    %99 = vector.broadcast %cst_47 : f32 to vector<1x128xf32>
    %100 = arith.addf %92, %99 : vector<1x128xf32>
    %101 = math.rsqrt %100 : vector<1x128xf32>
    %102 = vector.broadcast %11 : vector<8x1xf32> to vector<8x128xf32>
    %103 = vector.broadcast %101 : vector<1x128xf32> to vector<8x128xf32>
    %104 = arith.mulf %102, %103 : vector<8x128xf32>
    %105 = arith.addf %98, %104 : vector<8x128xf32>
    %106 = arith.mulf %78, %105 : vector<8x128xf32>
    %c0_48 = arith.constant 0 : index
    %c0_49 = arith.constant 0 : index
    %107 = vector.load %arg7[%c0_48, %c0_49] : memref<1x128xf32, #tpu.memory_space<vmem>>, vector<1x128xf32>
    %108 = vector.broadcast %107 : vector<1x128xf32> to vector<8x128xf32>
    %109 = arith.mulf %106, %108 : vector<8x128xf32>
    %c0_50 = arith.constant 0 : index
    %c0_51 = arith.constant 0 : index
    %110 = vector.load %arg8[%c0_50, %c0_51] : memref<1x128xf32, #tpu.memory_space<vmem>>, vector<1x128xf32>
    %111 = vector.broadcast %110 : vector<1x128xf32> to vector<8x128xf32>
    %112 = arith.addf %109, %111 : vector<8x128xf32>
    %cst_52 = arith.constant 0.000000e+00 : f32
    %113 = vector.broadcast %cst_52 : f32 to vector<8x128xf32>
    %114 = arith.maximumf %112, %113 : vector<8x128xf32>
    %c0_53 = arith.constant 0 : index
    %c0_54 = arith.constant 0 : index
    %115 = vector.load %arg9[%c0_53, %c0_54] : memref<128x128xf32, #tpu.memory_space<vmem>>, vector<128x128xf32>
    %cst_55 = arith.constant dense<0.000000e+00> : vector<8x128xf32>
    %116 = tpu.matmul %114, %115, %cst_55 {dimension_numbers = #tpu.dot_dimension_numbers<[1], [0], [0], [1], [0, 0, 1, 1], [], []>} : vector<8x128xf32>, vector<128x128xf32>, vector<8x128xf32> -> vector<8x128xf32>
    %c0_56 = arith.constant 0 : index
    %c0_57 = arith.constant 0 : index
    %117 = vector.load %arg10[%c0_56, %c0_57] : memref<1x128xf32, #tpu.memory_space<vmem>>, vector<1x128xf32>
    %118 = vector.broadcast %117 : vector<1x128xf32> to vector<8x128xf32>
    %119 = arith.addf %116, %118 : vector<8x128xf32>
    %120 = vector.broadcast %4 : vector<8x1xf32> to vector<8x128xf32>
    %121 = arith.mulf %119, %120 : vector<8x128xf32>
    %cst_58 = arith.constant dense<0.000000e+00> : vector<128xf32>
    %122 = vector.multi_reduction <add>, %121, %cst_58 [0] : vector<8x128xf32> to vector<128xf32>
    %123 = vector.shape_cast %122 : vector<128xf32> to vector<1x128xf32>
    %cst_59 = arith.constant 5.000000e-01 : f32
    %124 = vector.broadcast %cst_59 : f32 to vector<1x128xf32>
    %125 = arith.mulf %123, %124 : vector<1x128xf32>
    %126 = vector.broadcast %11 : vector<8x1xf32> to vector<8x128xf32>
    %127 = arith.mulf %119, %126 : vector<8x128xf32>
    %cst_60 = arith.constant dense<0.000000e+00> : vector<128xf32>
    %128 = vector.multi_reduction <add>, %127, %cst_60 [0] : vector<8x128xf32> to vector<128xf32>
    %129 = vector.shape_cast %128 : vector<128xf32> to vector<1x128xf32>
    %cst_61 = arith.constant 5.000000e-01 : f32
    %130 = vector.broadcast %cst_61 : f32 to vector<1x128xf32>
    %131 = arith.mulf %129, %130 : vector<1x128xf32>
    %132 = vector.broadcast %4 : vector<8x1xf32> to vector<8x128xf32>
    %133 = vector.broadcast %125 : vector<1x128xf32> to vector<8x128xf32>
    %134 = arith.mulf %132, %133 : vector<8x128xf32>
    %135 = vector.broadcast %11 : vector<8x1xf32> to vector<8x128xf32>
    %136 = vector.broadcast %131 : vector<1x128xf32> to vector<8x128xf32>
    %137 = arith.mulf %135, %136 : vector<8x128xf32>
    %138 = arith.addf %134, %137 : vector<8x128xf32>
    %139 = arith.subf %119, %138 : vector<8x128xf32>
    %140 = arith.mulf %139, %139 : vector<8x128xf32>
    %141 = vector.broadcast %4 : vector<8x1xf32> to vector<8x128xf32>
    %142 = arith.mulf %140, %141 : vector<8x128xf32>
    %cst_62 = arith.constant dense<0.000000e+00> : vector<128xf32>
    %143 = vector.multi_reduction <add>, %142, %cst_62 [0] : vector<8x128xf32> to vector<128xf32>
    %144 = vector.shape_cast %143 : vector<128xf32> to vector<1x128xf32>
    %cst_63 = arith.constant 5.000000e-01 : f32
    %145 = vector.broadcast %cst_63 : f32 to vector<1x128xf32>
    %146 = arith.mulf %144, %145 : vector<1x128xf32>
    %147 = arith.mulf %139, %139 : vector<8x128xf32>
    %148 = vector.broadcast %11 : vector<8x1xf32> to vector<8x128xf32>
    %149 = arith.mulf %147, %148 : vector<8x128xf32>
    %cst_64 = arith.constant dense<0.000000e+00> : vector<128xf32>
    %150 = vector.multi_reduction <add>, %149, %cst_64 [0] : vector<8x128xf32> to vector<128xf32>
    %151 = vector.shape_cast %150 : vector<128xf32> to vector<1x128xf32>
    %cst_65 = arith.constant 5.000000e-01 : f32
    %152 = vector.broadcast %cst_65 : f32 to vector<1x128xf32>
    %153 = arith.mulf %151, %152 : vector<1x128xf32>
    %cst_66 = arith.constant 9.99999974E-6 : f32
    %154 = vector.broadcast %cst_66 : f32 to vector<1x128xf32>
    %155 = arith.addf %146, %154 : vector<1x128xf32>
    %156 = math.rsqrt %155 : vector<1x128xf32>
    %157 = vector.broadcast %4 : vector<8x1xf32> to vector<8x128xf32>
    %158 = vector.broadcast %156 : vector<1x128xf32> to vector<8x128xf32>
    %159 = arith.mulf %157, %158 : vector<8x128xf32>
    %cst_67 = arith.constant 9.99999974E-6 : f32
    %160 = vector.broadcast %cst_67 : f32 to vector<1x128xf32>
    %161 = arith.addf %153, %160 : vector<1x128xf32>
    %162 = math.rsqrt %161 : vector<1x128xf32>
    %163 = vector.broadcast %11 : vector<8x1xf32> to vector<8x128xf32>
    %164 = vector.broadcast %162 : vector<1x128xf32> to vector<8x128xf32>
    %165 = arith.mulf %163, %164 : vector<8x128xf32>
    %166 = arith.addf %159, %165 : vector<8x128xf32>
    %167 = arith.mulf %139, %166 : vector<8x128xf32>
    %c0_68 = arith.constant 0 : index
    %c0_69 = arith.constant 0 : index
    %168 = vector.load %arg11[%c0_68, %c0_69] : memref<1x128xf32, #tpu.memory_space<vmem>>, vector<1x128xf32>
    %169 = vector.broadcast %168 : vector<1x128xf32> to vector<8x128xf32>
    %170 = arith.mulf %167, %169 : vector<8x128xf32>
    %c0_70 = arith.constant 0 : index
    %c0_71 = arith.constant 0 : index
    %171 = vector.load %arg12[%c0_70, %c0_71] : memref<1x128xf32, #tpu.memory_space<vmem>>, vector<1x128xf32>
    %172 = vector.broadcast %171 : vector<1x128xf32> to vector<8x128xf32>
    %173 = arith.addf %170, %172 : vector<8x128xf32>
    %cst_72 = arith.constant 0.000000e+00 : f32
    %174 = vector.broadcast %cst_72 : f32 to vector<8x128xf32>
    %175 = arith.maximumf %173, %174 : vector<8x128xf32>
    %c0_73 = arith.constant 0 : index
    %c0_74 = arith.constant 0 : index
    %176 = vector.load %arg13[%c0_73, %c0_74] : memref<128x128xf32, #tpu.memory_space<vmem>>, vector<128x128xf32>
    %cst_75 = arith.constant dense<0.000000e+00> : vector<8x128xf32>
    %177 = tpu.matmul %175, %176, %cst_75 {dimension_numbers = #tpu.dot_dimension_numbers<[1], [0], [0], [1], [0, 0, 1, 1], [], []>} : vector<8x128xf32>, vector<128x128xf32>, vector<8x128xf32> -> vector<8x128xf32>
    %c0_76 = arith.constant 0 : index
    %c0_77 = arith.constant 0 : index
    %178 = vector.load %arg14[%c0_76, %c0_77] : memref<1x128xf32, #tpu.memory_space<vmem>>, vector<1x128xf32>
    %179 = vector.broadcast %178 : vector<1x128xf32> to vector<8x128xf32>
    %180 = arith.addf %177, %179 : vector<8x128xf32>
    %c0_78 = arith.constant 0 : index
    %c0_79 = arith.constant 0 : index
    %181 = vector.load %arg15[%c0_78, %c0_79] : memref<8x128xf32, #tpu.memory_space<vmem>>, vector<8x128xf32>
    tpu.vector_store %arg15[%c0_78, %c0_79], %180 {strides = array<i32>} : memref<8x128xf32, #tpu.memory_space<vmem>>, vector<8x128xf32>,
    return
  }
}

</mosaic_0001>

<bundles_post_ra>
// kernel: vicreg_cnn2_forward.1
= control target key start
LH: loop header
LB: loop body
LE: loop exit
PB: predicated region body
PF: predicated region fallthrough
CT: control target
= control target key end

     0   :  { %s2581_s1 = inlined_call_operand.vmem [shape: f32[2,128,128], index: 1, kind: input, shape index: {}]   ;;  %s2582_s0 = inlined_call_operand.vmem [shape: f32[1024,128], index: 0, kind: input, shape index: {}]   ;;  %s2583_s2 = inlined_call_operand.vmem [shape: f32[2,8,512], index: 2, kind: input, shape index: {}]   ;;  %s2584_s3 = inlined_call_operand.vmem [shape: f32[2,128,128], index: 3, kind: input, shape index: {}]   ;;  %s2585_s5 = inlined_call_operand.vmem [shape: f32[128,128], index: 5, kind: input, shape index: {}]   ;;  %s2586_s4 = inlined_call_operand.vmem [shape: f32[2,1,128], index: 4, kind: input, shape index: {}]   ;;  %s2587_s6 = inlined_call_operand.vmem [shape: f32[1,128], index: 6, kind: input, shape index: {}]   ;;  %s2588_s7 = inlined_call_operand.vmem [shape: f32[1,128], index: 7, kind: input, shape index: {}]   ;;  %s2589_s8 = inlined_call_operand.vmem [shape: f32[1,128], index: 8, kind: input, shape index: {}]   ;;  %s2590_s10 = inlined_call_operand.vmem [shape: f32[1,128], index: 10, kind: input, shape index: {}]   ;;  %s2591_s11 = inlined_call_operand.vmem [shape: f32[1,128], index: 11, kind: input, shape index: {}]   ;;  %s2592_s12 = inlined_call_operand.vmem [shape: f32[1,128], index: 12, kind: input, shape index: {}]   ;;  %s2593_s9 = inlined_call_operand.vmem [shape: f32[128,128], index: 9, kind: input, shape index: {}]   ;;  %s2594_s14 = inlined_call_operand.vmem [shape: f32[1,128], index: 14, kind: input, shape index: {}]   ;;  %s2595_s13 = inlined_call_operand.vmem [shape: f32[128,128], index: 13, kind: input, shape index: {}]   ;;  %s2596_s15 = inlined_call_operand.vmem [shape: f32[8,128], index: 15, kind: output, shape index: {}]  }
   0x1   :  { %v1314_v0 = vld [vmem:[%s2581_s1 + $0xf8] sm:$0xff]  ;;  %v1313_v1 = vld [vmem:[%s2581_s1 + $0xf0] sm:$0xff]  ;;  %v1312_v2 = vld [vmem:[%s2581_s1 + $0xe8] sm:$0xff] }
   0x2   :  { %494 = vmatpush.msra.mxu1 %v1314_v0  ;;  %1352 = vmatpush.msra.mxu2 %v1314_v0  ;;  %v1311_v3 = vld [vmem:[%s2581_s1 + $0xe0] sm:$0xff]  ;;  %v1310_v4 = vld [vmem:[%s2581_s1 + $0xd8] sm:$0xff]  ;;  %v1309_v5 = vld [vmem:[%s2581_s1 + $0xd0] sm:$0xff] }
   0x3   :  { %v1308_v6 = vld [vmem:[%s2581_s1 + $0xc8] sm:$0xff]  ;;  %v1307_v7 = vld [vmem:[%s2581_s1 + $0xc0] sm:$0xff]  ;;  %v1306_v8 = vld [vmem:[%s2581_s1 + $0xb8] sm:$0xff] }
   0x4   :  { %495 = vmatpush.msra.mxu1 %v1313_v1  ;;  %1353 = vmatpush.msra.mxu2 %v1313_v1  ;;  %v1305_v9 = vld [vmem:[%s2581_s1 + $0xb0] sm:$0xff]  ;;  %v1304_v10 = vld [vmem:[%s2581_s1 + $0xa8] sm:$0xff]  ;;  %v1303_v11 = vld [vmem:[%s2581_s1 + $0xa0] sm:$0xff] }
   0x5   :  { %v1302_v12 = vld [vmem:[%s2581_s1 + $0x98] sm:$0xff]  ;;  %v1301_v13 = vld [vmem:[%s2581_s1 + $0x90] sm:$0xff]  ;;  %v1300_v15 = vld [vmem:[%s2581_s1 + $0x88] sm:$0xff] }
   0x6   :  { %496 = vmatpush.msra.mxu1 %v1312_v2  ;;  %1354 = vmatpush.msra.mxu2 %v1312_v2  ;;  %v139_v14 = vld [vmem:[%s2581_s1 + $0x78] sm:$0xff]  ;;  %v1299_v16 = vld [vmem:[%s2581_s1 + $0x80] sm:$0xff]  ;;  %v138_v18 = vld [vmem:[%s2581_s1 + $0x70] sm:$0xff] }
   0x7   :  { %140 = vmatpush.msra.mxu0 %v139_v14  ;;  %1336 = vmatpush.msra.mxu3 %v139_v14  ;;  %v413_v17 = vld [vmem:[%s2582_s0 + $0x200] sm:$0xff]  ;;  %v137_v19 = vld [vmem:[%s2581_s1 + $0x68] sm:$0xff]  ;;  %v135_v21 = vld [vmem:[%s2581_s1 + $0x58] sm:$0xff] }
   0x8   :  { %497 = vmatpush.msra.mxu1 %v1311_v3  ;;  %1355 = vmatpush.msra.mxu2 %v1311_v3  ;;  %v136_v20 = vld [vmem:[%s2581_s1 + $0x60] sm:$0xff]  ;;  %v414_v22 = vld [vmem:[%s2582_s0 + $0x208] sm:$0xff]  ;;  %v134_v23 = vld [vmem:[%s2581_s1 + $0x50] sm:$0xff] }
   0x9   :  { %141 = vmatpush.msra.mxu0 %v138_v18  ;;  %1337 = vmatpush.msra.mxu3 %v138_v18  ;;  %v133_v24 = vld [vmem:[%s2581_s1 + $0x48] sm:$0xff]  ;;  %v132_v25 = vld [vmem:[%s2581_s1 + $0x40] sm:$0xff]  ;;  %v131_v26 = vld [vmem:[%s2581_s1 + $0x38] sm:$0xff] }
   0xa   :  { %498 = vmatpush.msra.mxu1 %v1310_v4  ;;  %1356 = vmatpush.msra.mxu2 %v1310_v4  ;;  %v415_v27 = vld [vmem:[%s2582_s0 + $0x210] sm:$0xff]  ;;  %v129_v29 = vld [vmem:[%s2581_s1 + $0x28] sm:$0xff]  ;;  %v128_v30 = vld [vmem:[%s2581_s1 + $0x20] sm:$0xff] }
   0xb   :  { %142 = vmatpush.msra.mxu0 %v137_v19  ;;  %1338 = vmatpush.msra.mxu3 %v137_v19  ;;  %v130_v28 = vld [vmem:[%s2581_s1 + $0x30] sm:$0xff]  ;;  %v127_v31 = vld [vmem:[%s2581_s1 + $0x18] sm:$0xff]  ;;  %v125_v34 = vld [vmem:[%s2581_s1 + $0x8] sm:$0xff] }
   0xc   :  { %499 = vmatpush.msra.mxu1 %v1309_v5  ;;  %1357 = vmatpush.msra.mxu2 %v1309_v5  ;;  %v416_v32 = vld [vmem:[%s2582_s0 + $0x218] sm:$0xff]  ;;  %v126_v33 = vld [vmem:[%s2581_s1 + $0x10] sm:$0xff]  ;;  %v124_v35 = vld [vmem:[%s2581_s1] sm:$0xff] }
   0xd   :  { %143 = vmatpush.msra.mxu0 %v136_v20  ;;  %1339 = vmatpush.msra.mxu3 %v136_v20  ;;  %v60_v36 = vld [vmem:[%s2582_s0] sm:$0xff]  ;;  %v61_v38 = vld [vmem:[%s2582_s0 + $0x8] sm:$0xff]  ;;  %v62_v40 = vld [vmem:[%s2582_s0 + $0x10] sm:$0xff] }
   0xe   :  { %500 = vmatpush.msra.mxu1 %v1308_v6  ;;  %1358 = vmatpush.msra.mxu2 %v1308_v6  ;;  %v417_v37 = vld [vmem:[%s2582_s0 + $0x220] sm:$0xff]  ;;  %v418_v39 = vld [vmem:[%s2582_s0 + $0x228] sm:$0xff]  ;;  %v419_v41 = vld [vmem:[%s2582_s0 + $0x230] sm:$0xff] }
   0xf   :  { %144 = vmatpush.msra.mxu0 %v135_v21  ;;  %1340 = vmatpush.msra.mxu3 %v135_v21  ;;  %v63_v42 = vld [vmem:[%s2582_s0 + $0x18] sm:$0xff]  ;;  %v64_v44 = vld [vmem:[%s2582_s0 + $0x20] sm:$0xff]  ;;  %v65_v46 = vld [vmem:[%s2582_s0 + $0x28] sm:$0xff] }
  0x10   :  { %501 = vmatpush.msra.mxu1 %v1307_v7  ;;  %1359 = vmatpush.msra.mxu2 %v1307_v7  ;;  %v420_v43 = vld [vmem:[%s2582_s0 + $0x238] sm:$0xff]  ;;  %v421_v45 = vld [vmem:[%s2582_s0 + $0x240] sm:$0xff]  ;;  %v422_v47 = vld [vmem:[%s2582_s0 + $0x248] sm:$0xff] }
  0x11   :  { %145 = vmatpush.msra.mxu0 %v134_v23  ;;  %1341 = vmatpush.msra.mxu3 %v134_v23  ;;  %v66_v48 = vld [vmem:[%s2582_s0 + $0x30] sm:$0xff]  ;;  %v67_v50 = vld [vmem:[%s2582_s0 + $0x38] sm:$0xff]  ;;  %v457_v52 = vld [vmem:[%s2582_s0 + $0x360] sm:$0xff] }
  0x12   :  { %502 = vmatpush.msra.mxu1 %v1306_v8  ;;  %1360 = vmatpush.msra.mxu2 %v1306_v8  ;;  %v423_v49 = vld [vmem:[%s2582_s0 + $0x250] sm:$0xff]  ;;  %v424_v51 = vld [vmem:[%s2582_s0 + $0x258] sm:$0xff]  ;;  %v425_v53 = vld [vmem:[%s2582_s0 + $0x260] sm:$0xff] }
  0x13   :  { %146 = vmatpush.msra.mxu0 %v133_v24  ;;  %1342 = vmatpush.msra.mxu3 %v133_v24  ;;  %v68_v54 = vld [vmem:[%s2582_s0 + $0x40] sm:$0xff]  ;;  %v458_v55 = vld [vmem:[%s2582_s0 + $0x368] sm:$0xff]  ;;  %v459_v58 = vld [vmem:[%s2582_s0 + $0x370] sm:$0xff] }
  0x14   :  { %503 = vmatpush.msra.mxu1 %v1305_v9  ;;  %1361 = vmatpush.msra.mxu2 %v1305_v9  ;;  %v426_v56 = vld [vmem:[%s2582_s0 + $0x268] sm:$0xff]  ;;  %v427_v59 = vld [vmem:[%s2582_s0 + $0x270] sm:$0xff]  ;;  %v460_v61 = vld [vmem:[%s2582_s0 + $0x378] sm:$0xff] }
  0x15   :  { %147 = vmatpush.msra.mxu0 %v132_v25  ;;  %1343 = vmatpush.msra.mxu3 %v132_v25  ;;  %v69_v57 = vld [vmem:[%s2582_s0 + $0x48] sm:$0xff]  ;;  %v70_v60 = vld [vmem:[%s2582_s0 + $0x50] sm:$0xff]  ;;  %v428_v62 = vld [vmem:[%s2582_s0 + $0x278] sm:$0xff] }
  0x16   :  { %504 = vmatpush.msra.mxu1 %v1304_v10  ;;  %1362 = vmatpush.msra.mxu2 %v1304_v10  ;;  %v71_v63 = vld [vmem:[%s2582_s0 + $0x58] sm:$0xff]  ;;  %v461_v0 = vld [vmem:[%s2582_s0 + $0x380] sm:$0xff]  ;;  %v462_v4 = vld [vmem:[%s2582_s0 + $0x388] sm:$0xff] }
  0x17   :  { %148 = vmatpush.msra.mxu0 %v131_v26  ;;  %1344 = vmatpush.msra.mxu3 %v131_v26  ;;  %v429_v2 = vld [vmem:[%s2582_s0 + $0x280] sm:$0xff]  ;;  %v430_v6 = vld [vmem:[%s2582_s0 + $0x288] sm:$0xff]  ;;  %v463_v8 = vld [vmem:[%s2582_s0 + $0x390] sm:$0xff] }
  0x18   :  { %505 = vmatpush.msra.mxu1 %v1303_v11  ;;  %1363 = vmatpush.msra.mxu2 %v1303_v11  ;;  %v72_v3 = vld [vmem:[%s2582_s0 + $0x60] sm:$0xff]  ;;  %v73_v7 = vld [vmem:[%s2582_s0 + $0x68] sm:$0xff]  ;;  %v431_v10 = vld [vmem:[%s2582_s0 + $0x290] sm:$0xff] }
  0x19   :  { %149 = vmatpush.msra.mxu0 %v130_v28  ;;  %1345 = vmatpush.msra.mxu3 %v130_v28  ;;  %v74_v11 = vld [vmem:[%s2582_s0 + $0x70] sm:$0xff]  ;;  %v432_v14 = vld [vmem:[%s2582_s0 + $0x298] sm:$0xff]  ;;  %v433_v20 = vld [vmem:[%s2582_s0 + $0x2a0] sm:$0xff] }
  0x1a   :  { %506 = vmatpush.msra.mxu1 %v1302_v12  ;;  %1364 = vmatpush.msra.mxu2 %v1302_v12  ;;  %v464_v12 = vld [vmem:[%s2582_s0 + $0x398] sm:$0xff]  ;;  %v76_v21 = vld [vmem:[%s2582_s0 + $0x80] sm:$0xff]  ;;  %v466_v23 = vld [vmem:[%s2582_s0 + $0x3a8] sm:$0xff] }
  0x1b   :  { %150 = vmatpush.msra.mxu0 %v129_v29  ;;  %1346 = vmatpush.msra.mxu3 %v129_v29  ;;  %v434_v26 = vld [vmem:[%s2582_s0 + $0x2a8] sm:$0xff]  ;;  %v106_v28 = vld [vmem:[%s2582_s0 + $0x170] sm:$0xff] }
  0x1c   :  { %507 = vmatpush.msra.mxu1 %v1301_v13  ;;  %1365 = vmatpush.msra.mxu2 %v1301_v13  ;;  %v467_v29 = vld [vmem:[%s2582_s0 + $0x3b0] sm:$0xff] }
  0x1d   :  { %151 = vmatpush.msra.mxu0 %v128_v30  ;;  %1347 = vmatpush.msra.mxu3 %v128_v30 }
  0x1e   :  { %508 = vmatpush.msra.mxu1 %v1300_v15  ;;  %1366 = vmatpush.msra.mxu2 %v1300_v15  ;;  %v75_v15 = vld [vmem:[%s2582_s0 + $0x78] sm:$0xff] }
  0x1f   :  { %152 = vmatpush.msra.mxu0 %v127_v31  ;;  %1348 = vmatpush.msra.mxu3 %v127_v31 }
  0x20   :  { %509 = vmatpush.msra.mxu1 %v1299_v16  ;;  %1367 = vmatpush.msra.mxu2 %v1299_v16  ;;  %v104_v16 = vld [vmem:[%s2582_s0 + $0x160] sm:$0xff] }
  0x21   :  { %510 = vmatmul.f32.vlgmr.msra.gmra.mxu1 %v413_v17  ;;  %153 = vmatpush.msra.mxu0 %v126_v33  ;;  %v465_v17 = vld [vmem:[%s2582_s0 + $0x3a0] sm:$0xff] }
  0x22   :  { %1349 = vmatpush.msra.mxu3 %v126_v33  ;;  %642 = vmatmul.f32.vlgmr.msra.gmra.mxu2 %v457_v52  ;;  %v78_v33 = vld [vmem:[%s2582_s0 + $0x90] sm:$0xff] }
  0x23   :  { %154 = vmatpush.msra.mxu0 %v125_v34  ;;  %v110_v52 = vld [vmem:[%s2582_s0 + $0x190] sm:$0xff] }
  0x24   :  { %1350 = vmatpush.msra.mxu3 %v125_v34  ;;  %v107_v34 = vld [vmem:[%s2582_s0 + $0x178] sm:$0xff] }
  0x25   :  { %155 = vmatpush.msra.mxu0 %v124_v35 }
  0x26   :  { %1351 = vmatpush.msra.mxu3 %v124_v35  ;;  %156 = vmatmul.f32.vlgmr.msra.gmra.mxu0 %v60_v36  ;;  %v468_v35 = vld [vmem:[%s2582_s0 + $0x3b8] sm:$0xff] }
  0x27   :  { %288 = vmatmul.f32.vlgmr.msra.gmra.mxu3 %v104_v16  ;;  %v442_v16 = vld [vmem:[%s2582_s0 + $0x2e8] sm:$0xff] }
  0x29   :  { %513 = vmatmul.f32.gmra.mxu1 %v414_v22  ;;  %v105_v22 = vld [vmem:[%s2582_s0 + $0x168] sm:$0xff] }
  0x2a   :  { %645 = vmatmul.f32.gmra.mxu2 %v458_v55 }
  0x2e   :  { %159 = vmatmul.f32.gmra.mxu0 %v61_v38  ;;  %v436_v38 = vld [vmem:[%s2582_s0 + $0x2b8] sm:$0xff] }
  0x2f   :  { %291 = vmatmul.f32.gmra.mxu3 %v105_v22 }
  0x31   :  { %516 = vmatmul.f32.gmra.mxu1 %v415_v27  ;;  %v77_v27 = vld [vmem:[%s2582_s0 + $0x88] sm:$0xff] }
  0x32   :  { %648 = vmatmul.f32.gmra.mxu2 %v459_v58  ;;  %v111_v58 = vld [vmem:[%s2582_s0 + $0x198] sm:$0xff] }
  0x36   :  { %162 = vmatmul.f32.gmra.mxu0 %v62_v40  ;;  %v108_v40 = vld [vmem:[%s2582_s0 + $0x180] sm:$0xff] }
  0x37   :  { %294 = vmatmul.f32.gmra.mxu3 %v106_v28  ;;  %v86_v28 = vld [vmem:[%s2582_s0 + $0xd0] sm:$0xff] }
  0x39   :  { %519 = vmatmul.f32.gmra.mxu1 %v416_v32  ;;  %v435_v32 = vld [vmem:[%s2582_s0 + $0x2b0] sm:$0xff] }
  0x3a   :  { %651 = vmatmul.f32.gmra.mxu2 %v460_v61 }
  0x3e   :  { %165 = vmatmul.f32.gmra.mxu0 %v63_v42 }
  0x3f   :  { %297 = vmatmul.f32.gmra.mxu3 %v107_v34 }
  0x41   :  { %522 = vmatmul.f32.gmra.mxu1 %v417_v37 }
  0x42   :  { %654 = vmatmul.f32.gmra.mxu2 %v461_v0  ;;  %v112_v0 = vld [vmem:[%s2582_s0 + $0x1a0] sm:$0xff] }
  0x46   :  { %168 = vmatmul.f32.gmra.mxu0 %v64_v44  ;;  %v437_v44 = vld [vmem:[%s2582_s0 + $0x2c0] sm:$0xff] }
  0x47   :  { %300 = vmatmul.f32.gmra.mxu3 %v108_v40 }
  0x49   :  { %525 = vmatmul.f32.gmra.mxu1 %v418_v39  ;;  %v79_v39 = vld [vmem:[%s2582_s0 + $0x98] sm:$0xff] }
  0x4a   :  { %657 = vmatmul.f32.gmra.mxu2 %v462_v4 }
  0x4e   :  { %171 = vmatmul.f32.gmra.mxu0 %v65_v46  ;;  %v109_v46 = vld [vmem:[%s2582_s0 + $0x188] sm:$0xff] }
  0x4f   :  { %303 = vmatmul.f32.gmra.mxu3 %v109_v46 }
  0x51   :  { %528 = vmatmul.f32.gmra.mxu1 %v419_v41  ;;  %v469_v41 = vld [vmem:[%s2582_s0 + $0x3c0] sm:$0xff] }
  0x52   :  { %660 = vmatmul.f32.gmra.mxu2 %v463_v8  ;;  %v84_v8 = vld [vmem:[%s2582_s0 + $0xc0] sm:$0xff] }
  0x56   :  { %174 = vmatmul.f32.gmra.mxu0 %v66_v48 }
  0x57   :  { %306 = vmatmul.f32.gmra.mxu3 %v110_v52  ;;  %v445_v52 = vld [vmem:[%s2582_s0 + $0x300] sm:$0xff] }
  0x59   :  { %531 = vmatmul.f32.gmra.mxu1 %v420_v43 }
  0x5a   :  { %663 = vmatmul.f32.gmra.mxu2 %v464_v12 }
  0x5e   :  { %177 = vmatmul.f32.gmra.mxu0 %v67_v50  ;;  %v438_v50 = vld [vmem:[%s2582_s0 + $0x2c8] sm:$0xff] }
  0x5f   :  { %309 = vmatmul.f32.gmra.mxu3 %v111_v58 }
  0x61   :  { %534 = vmatmul.f32.gmra.mxu1 %v421_v45  ;;  %v80_v45 = vld [vmem:[%s2582_s0 + $0xa0] sm:$0xff] }
  0x62   :  { %666 = vmatmul.f32.gmra.mxu2 %v465_v17  ;;  %v85_v17 = vld [vmem:[%s2582_s0 + $0xc8] sm:$0xff] }
  0x66   :  { %180 = vmatmul.f32.gmra.mxu0 %v68_v54 }
  0x67   :  { %312 = vmatmul.f32.gmra.mxu3 %v112_v0 }
  0x69   :  { %537 = vmatmul.f32.gmra.mxu1 %v422_v47  ;;  %v470_v47 = vld [vmem:[%s2582_s0 + $0x3c8] sm:$0xff] }
  0x6a   :  { %669 = vmatmul.f32.gmra.mxu2 %v466_v23 }
  0x6e   :  { %183 = vmatmul.f32.gmra.mxu0 %v69_v57  ;;  %v82_v57 = vld [vmem:[%s2582_s0 + $0xb0] sm:$0xff] }
  0x71   :  { %540 = vmatmul.f32.gmra.mxu1 %v423_v49 }
  0x72   :  { %672 = vmatmul.f32.gmra.mxu2 %v467_v29  ;;  %v115_v29 = vld [vmem:[%s2582_s0 + $0x1b8] sm:$0xff] }
  0x76   :  { %186 = vmatmul.f32.gmra.mxu0 %v70_v60 }
  0x79   :  { %543 = vmatmul.f32.gmra.mxu1 %v424_v51  ;;  %v81_v51 = vld [vmem:[%s2582_s0 + $0xa8] sm:$0xff] }
  0x7a   :  { %675 = vmatmul.f32.gmra.mxu2 %v468_v35 }
  0x7e   :  { %189 = vmatmul.f32.gmra.mxu0 %v71_v63  ;;  %v83_v63 = vld [vmem:[%s2582_s0 + $0xb8] sm:$0xff] }
  0x81   :  { %546 = vmatmul.f32.gmra.mxu1 %v425_v53  ;;  %v471_v53 = vld [vmem:[%s2582_s0 + $0x3d0] sm:$0xff] }
  0x82   :  { %678 = vmatmul.f32.gmra.mxu2 %v469_v41  ;;  %v116_v41 = vld [vmem:[%s2582_s0 + $0x1c0] sm:$0xff] }
  0x86   :  { %192 = vmatmul.f32.gmra.mxu0 %v72_v3 }
  0x89   :  { %549 = vmatmul.f32.gmra.mxu1 %v426_v56  ;;  %v439_v56 = vld [vmem:[%s2582_s0 + $0x2d0] sm:$0xff] }
  0x8a   :  { %681 = vmatmul.f32.gmra.mxu2 %v470_v47 }
  0x8e   :  { %195 = vmatmul.f32.gmra.mxu0 %v73_v7  ;;  %v441_v7 = vld [vmem:[%s2582_s0 + $0x2e0] sm:$0xff] }
  0x91   :  { %552 = vmatmul.f32.gmra.mxu1 %v427_v59  ;;  %v472_v59 = vld [vmem:[%s2582_s0 + $0x3d8] sm:$0xff] }
  0x92   :  { %684 = vmatmul.f32.gmra.mxu2 %v471_v53  ;;  %v88_v53 = vld [vmem:[%s2582_s0 + $0xe0] sm:$0xff] }
  0x96   :  { %198 = vmatmul.f32.gmra.mxu0 %v74_v11  ;;  %v474_v11 = vld [vmem:[%s2582_s0 + $0x3e8] sm:$0xff] }
  0x99   :  { %555 = vmatmul.f32.gmra.mxu1 %v428_v62  ;;  %v440_v62 = vld [vmem:[%s2582_s0 + $0x2d8] sm:$0xff] }
  0x9a   :  { %687 = vmatmul.f32.gmra.mxu2 %v472_v59 }
  0x9e   :  { %v1662_v1 = vpop.f32.mrf.mxu1  ;;  %201 = vmatmul.f32.gmra.mxu0 %v75_v15 }
  0xa1   :  { %558 = vmatmul.f32.gmra.mxu1 %v429_v2  ;;  %v473_v2 = vld [vmem:[%s2582_s0 + $0x3e0] sm:$0xff] }
  0xa2   :  { %690 = vmatmul.f32.gmra.mxu2 %v473_v2  ;;  %v446_v2 = vld [vmem:[%s2582_s0 + $0x308] sm:$0xff] }
  0xa3   :  { %v1709_v18 = vpop.f32.mrf.mxu0 }
  0xa4   :  { %2597 = vst [vmem:[#allocation2_spill] sm:$0xff] %v1709_v18 }
  0xa5   :  { %v1839_v4 = vpop.f32.mrf.mxu2 }
  0xa6   :  { %v1673_v5 = vpop.f32.mrf.mxu1  ;;  %204 = vmatmul.f32.gmra.mxu0 %v76_v21  ;;  %v475_v21 = vld [vmem:[%s2582_s0 + $0x3f0] sm:$0xff] }
  0xa9   :  { %561 = vmatmul.f32.gmra.mxu1 %v430_v6 }
  0xaa   :  { %693 = vmatmul.f32.gmra.mxu2 %v474_v11 }
  0xab   :  { %v1725_v24 = vpop.f32.mrf.mxu0 }
  0xac   :  { %2598 = vst [vmem:[#allocation3_spill] sm:$0xff] %v1725_v24 }
  0xae   :  { %v1684_v9 = vpop.f32.mrf.mxu1  ;;  %207 = vmatmul.f32.gmra.mxu0 %v77_v27  ;;  %v443_v27 = vld [vmem:[%s2582_s0 + $0x2f0] sm:$0xff] }
  0xb1   :  { %564 = vmatmul.f32.gmra.mxu1 %v431_v10  ;;  %v113_v10 = vld [vmem:[%s2582_s0 + $0x1a8] sm:$0xff] }
  0xb2   :  { %315 = vmatmul.f32.gmra.mxu3 %v113_v10  ;;  %696 = vmatmul.f32.gmra.mxu2 %v475_v21 }
  0xb3   :  { %v1741_v30 = vpop.f32.mrf.mxu0 }
  0xb4   :  { %2599 = vst [vmem:[#allocation4_spill] sm:$0xff] %v1741_v30 }
  0xb6   :  { %v1695_v13 = vpop.f32.mrf.mxu1  ;;  %210 = vmatmul.f32.gmra.mxu0 %v78_v33 }
  0xb9   :  { %567 = vmatmul.f32.gmra.mxu1 %v432_v14  ;;  %v1855_v14 = vpop.f32.mrf.mxu2 }
  0xbb   :  { %v1757_v36 = vpop.f32.mrf.mxu0 }
  0xbc   :  { %2600 = vst [vmem:[#allocation5_spill] sm:$0xff] %v1757_v36 }
  0xbe   :  { %v1711_v19 = vpop.f32.mrf.mxu1  ;;  %213 = vmatmul.f32.gmra.mxu0 %v79_v39  ;;  %v87_v39 = vld [vmem:[%s2582_s0 + $0xd8] sm:$0xff] }
  0xbf   :  { %v707_v10 = vmax.f32 %v1711_v19, 0.0  ;;  %v119_v19 = vld [vmem:[%s2582_s0 + $0x1d8] sm:$0xff] }
  0xc1   :  { %570 = vmatmul.f32.gmra.mxu1 %v433_v20  ;;  %v114_v20 = vld [vmem:[%s2582_s0 + $0x1b0] sm:$0xff]  ;;  %v1871_v23 = vpop.f32.mrf.mxu2 }
  0xc2   :  { %318 = vmatmul.f32.gmra.mxu3 %v114_v20 }
  0xc3   :  { %v1773_v42 = vpop.f32.mrf.mxu0 }
  0xc4   :  { %2601 = vst [vmem:[#allocation6_spill] sm:$0xff] %v1773_v42 }
  0xc6   :  { %v1727_v25 = vpop.f32.mrf.mxu1  ;;  %216 = vmatmul.f32.gmra.mxu0 %v80_v45 }
  0xc9   :  { %573 = vmatmul.f32.gmra.mxu1 %v434_v26  ;;  %v1887_v34 = vpop.f32.mrf.mxu2 }
  0xca   :  { %321 = vmatmul.f32.gmra.mxu3 %v115_v29  ;;  %v750_v20 = vmax.f32 %v1887_v34, 0.0  ;;  %v747_v29 = vmax.f32 %v1839_v4, 0.0  ;;  %v121_v4 = vld [vmem:[%s2582_s0 + $0x1e8] sm:$0xff] }
  0xcb   :  { %v1789_v48 = vpop.f32.mrf.mxu0 }
  0xcc   :  { %2602 = vst [vmem:[#allocation7_spill] sm:$0xff] %v1789_v48 }
  0xce   :  { %v1743_v31 = vpop.f32.mrf.mxu1  ;;  %219 = vmatmul.f32.gmra.mxu0 %v81_v51 }
  0xd1   :  { %576 = vmatmul.f32.gmra.mxu1 %v435_v32  ;;  %v476_v32 = vld [vmem:[%s2582_s0 + $0x3f8] sm:$0xff] }
  0xd2   :  { %699 = vmatmul.f32.gmra.mxu2 %v476_v32  ;;  %324 = vmatmul.f32.gmra.mxu3 %v116_v41  ;;  %v1974_v32 = vpop.f32.mrf.mxu3 }
  0xd3   :  { %v1805_v54 = vpop.f32.mrf.mxu0  ;;  %2609 = vst [vmem:[#allocation14_spill] sm:$0xff] %v1974_v32 }
  0xd4   :  { %2603 = vst [vmem:[#allocation8_spill] sm:$0xff] %v1805_v54 }
  0xd6   :  { %v1759_v37 = vpop.f32.mrf.mxu1  ;;  %222 = vmatmul.f32.gmra.mxu0 %v82_v57  ;;  %v117_v57 = vld [vmem:[%s2582_s0 + $0x1c8] sm:$0xff] }
  0xd9   :  { %579 = vmatmul.f32.gmra.mxu1 %v436_v38  ;;  %v444_v38 = vld [vmem:[%s2582_s0 + $0x2f8] sm:$0xff] }
  0xda   :  { %327 = vmatmul.f32.gmra.mxu3 %v117_v57 }
  0xdb   :  { %v1821_v60 = vpop.f32.mrf.mxu0 }
  0xdc   :  { %2604 = vst [vmem:[#allocation9_spill] sm:$0xff] %v1821_v60 }
  0xde   :  { %v1775_v43 = vpop.f32.mrf.mxu1  ;;  %225 = vmatmul.f32.gmra.mxu0 %v83_v63 }
  0xdf   :  { %v711_v63 = vmax.f32 %v1775_v43, 0.0  ;;  %v118_v43 = vld [vmem:[%s2582_s0 + $0x1d0] sm:$0xff] }
  0xe1   :  { %582 = vmatmul.f32.gmra.mxu1 %v437_v44 }
  0xe2   :  { %330 = vmatmul.f32.gmra.mxu3 %v118_v43 }
  0xe3   :  { %v1837_v3 = vpop.f32.mrf.mxu0 }
  0xe4   :  { %2605 = vst [vmem:[#allocation10_spill] sm:$0xff] %v1837_v3 }
  0xe6   :  { %v1791_v49 = vpop.f32.mrf.mxu1  ;;  %228 = vmatmul.f32.gmra.mxu0 %v84_v8 }
  0xe7   :  { %v712_v59 = vmax.f32 %v1791_v49, 0.0  ;;  %v710_v49 = vmax.f32 %v1759_v37, 0.0  ;;  %v447_v37 = vld [vmem:[%s2582_s0 + $0x310] sm:$0xff] }
  0xe9   :  { %585 = vmatmul.f32.gmra.mxu1 %v438_v50  ;;  %v1900_v50 = vpop.f32.mrf.mxu2 }
  0xea   :  { %333 = vmatmul.f32.gmra.mxu3 %v119_v19  ;;  %v453_v19 = vld [vmem:[%s2582_s0 + $0x340] sm:$0xff] }
  0xeb   :  { %v1853_v12 = vpop.f32.mrf.mxu0 }
  0xec   :  { %2606 = vst [vmem:[#allocation11_spill] sm:$0xff] %v1853_v12 }
  0xee   :  { %v1807_v55 = vpop.f32.mrf.mxu1  ;;  %231 = vmatmul.f32.gmra.mxu0 %v85_v17  ;;  %v704_v17 = vmax.f32 %v1673_v5, 0.0  ;;  %v120_v5 = vld [vmem:[%s2582_s0 + $0x1e0] sm:$0xff] }
  0xef   :  { %v713_v58 = vmax.f32 %v1807_v55, 0.0  ;;  %v89_v55 = vld [vmem:[%s2582_s0 + $0xe8] sm:$0xff] }
  0xf1   :  { %588 = vmatmul.f32.gmra.mxu1 %v439_v56  ;;  %v1919_v0 = vpop.f32.mrf.mxu2 }
  0xf2   :  { %336 = vmatmul.f32.gmra.mxu3 %v120_v5 }
  0xf3   :  { %v1869_v22 = vpop.f32.mrf.mxu0 }
  0xf4   :  { %2607 = vst [vmem:[#allocation12_spill] sm:$0xff] %v1869_v22 }
  0xf6   :  { %v1823_v61 = vpop.f32.mrf.mxu1  ;;  %234 = vmatmul.f32.gmra.mxu0 %v86_v28  ;;  %v448_v28 = vld [vmem:[%s2582_s0 + $0x318] sm:$0xff] }
  0xf7   :  { %v714_v56 = vmax.f32 %v1823_v61, 0.0 }
  0xf9   :  { %591 = vmatmul.f32.gmra.mxu1 %v440_v62 }
  0xfa   :  { %339 = vmatmul.f32.gmra.mxu3 %v121_v4  ;;  %v98_v4 = vld [vmem:[%s2582_s0 + $0x130] sm:$0xff] }
  0xfb   :  { %v1885_v33 = vpop.f32.mrf.mxu0 }
  0xfc   :  { %2608 = vst [vmem:[#allocation13_spill] sm:$0xff] %v1885_v33 }
  0xfe   :  { %v547_v6 = vpop.f32.mrf.mxu1  ;;  %237 = vmatmul.f32.gmra.mxu0 %v87_v39  ;;  %v1989_v39 = vpop.f32.mrf.mxu3 }
  0xff   :  { %v715_v47 = vmax.f32 %v547_v6, 0.0  ;;  %v709_v6 = vmax.f32 %v1743_v31, 0.0  ;;  %v706_v31 = vmax.f32 %v1695_v13, 0.0  ;;  %v703_v13 = vmax.f32 %v1662_v1, 0.0  ;;  %2610 = vst [vmem:[#allocation15_spill] sm:$0xff] %v1989_v39 }
 0x100   :  { %v748_v1 = vmax.f32 %v1855_v14, 0.0  ;;  %v92_v14 = vld [vmem:[%s2582_s0 + $0x100] sm:$0xff] }
 0x101   :  { %594 = vmatmul.f32.gmra.mxu1 %v441_v7  ;;  %v708_v7 = vmax.f32 %v1727_v25, 0.0  ;;  %v705_v25 = vmax.f32 %v1684_v9, 0.0  ;;  %v91_v9 = vld [vmem:[%s2582_s0 + $0xf8] sm:$0xff] }
 0x103   :  { %v1898_v46 = vpop.f32.mrf.mxu0 }
 0x106   :  { %v550_v15 = vpop.f32.mrf.mxu1  ;;  %240 = vmatmul.f32.gmra.mxu0 %v88_v53  ;;  %v2006_v53 = vpop.f32.mrf.mxu3 }
 0x107   :  { %v716_v45 = vmax.f32 %v550_v15, 0.0  ;;  %v90_v15 = vld [vmem:[%s2582_s0 + $0xf0] sm:$0xff]  ;;  %2611 = vst [vmem:[#allocation16_spill] sm:$0xff] %v2006_v53 }
 0x109   :  { %597 = vmatmul.f32.gmra.mxu1 %v442_v16  ;;  %v1947_v16 = vpop.f32.mrf.mxu2 }
 0x10b   :  { %v1916_v62 = vpop.f32.mrf.mxu0 }
 0x10e   :  { %v553_v26 = vpop.f32.mrf.mxu1  ;;  %243 = vmatmul.f32.gmra.mxu0 %v89_v55  ;;  %v2023_v55 = vpop.f32.mrf.mxu3 }
 0x10f   :  { %v717_v44 = vmax.f32 %v553_v26, 0.0  ;;  %v749_v26 = vmax.f32 %v1871_v23, 0.0  ;;  %2612 = vst [vmem:[#allocation17_spill] sm:$0xff] %v2023_v55 }
 0x111   :  { %600 = vmatmul.f32.gmra.mxu1 %v443_v27  ;;  %v1971_v23 = vpop.f32.mrf.mxu2 }
 0x113   :  { %v1935_v8 = vpop.f32.mrf.mxu0 }
 0x116   :  { %v556_v35 = vpop.f32.mrf.mxu1  ;;  %246 = vmatmul.f32.gmra.mxu0 %v90_v15 }
 0x117   :  { %v718_v40 = vmax.f32 %v556_v35, 0.0 }
 0x119   :  { %603 = vmatmul.f32.gmra.mxu1 %v444_v38  ;;  %776 = vmatpush.msrb.mxu2 %v718_v40  ;;  %v449_v38 = vld [vmem:[%s2582_s0 + $0x320] sm:$0xff]  ;;  %v1991_v40 = vpop.f32.mrf.mxu2 }
 0x11b   :  { %777 = vmatpush.msrb.mxu2 %v717_v44  ;;  %v1955_v21 = vpop.f32.mrf.mxu0 }
 0x11d   :  { %778 = vmatpush.msrb.mxu2 %v716_v45  ;;  %v450_v45 = vld [vmem:[%s2582_s0 + $0x328] sm:$0xff] }
 0x11e   :  { %v1902_v51 = vpop.f32.mrf.mxu1  ;;  %249 = vmatmul.f32.gmra.mxu0 %v91_v9  ;;  %v97_v9 = vld [vmem:[%s2582_s0 + $0x128] sm:$0xff] }
 0x11f   :  { %779 = vmatpush.msrb.mxu2 %v715_v47  ;;  %v93_v47 = vld [vmem:[%s2582_s0 + $0x108] sm:$0xff] }
 0x121   :  { %606 = vmatmul.f32.gmra.mxu1 %v445_v52  ;;  %780 = vmatpush.msrb.mxu2 %v714_v56  ;;  %v122_v52 = vld [vmem:[%s2582_s0 + $0x1f0] sm:$0xff]  ;;  %v2010_v57 = vpop.f32.mrf.mxu2 }
 0x122   :  { %342 = vmatmul.f32.gmra.mxu3 %v122_v52 }
 0x123   :  { %781 = vmatpush.msrb.mxu2 %v713_v58  ;;  %v1976_v34 = vpop.f32.mrf.mxu0 }
 0x125   :  { %782 = vmatpush.msrb.mxu2 %v712_v59  ;;  %v451_v59 = vld [vmem:[%s2582_s0 + $0x330] sm:$0xff] }
 0x126   :  { %v1921_v61 = vpop.f32.mrf.mxu1  ;;  %252 = vmatmul.f32.gmra.mxu0 %v92_v14  ;;  %v455_v14 = vld [vmem:[%s2582_s0 + $0x350] sm:$0xff] }
 0x127   :  { %783 = vmatpush.msrb.mxu2 %v711_v63  ;;  %v94_v63 = vld [vmem:[%s2582_s0 + $0x110] sm:$0xff] }
 0x129   :  { %609 = vmatmul.f32.gmra.mxu1 %v446_v2  ;;  %784 = vmatpush.msrb.mxu2 %v710_v49  ;;  %v123_v2 = vld [vmem:[%s2582_s0 + $0x1f8] sm:$0xff] }
 0x12a   :  { %345 = vmatmul.f32.gmra.mxu3 %v123_v2 }
 0x12b   :  { %785 = vmatpush.msrb.mxu2 %v709_v6  ;;  %v1993_v41 = vpop.f32.mrf.mxu0  ;;  %v452_v6 = vld [vmem:[%s2582_s0 + $0x338] sm:$0xff] }
 0x12d   :  { %786 = vmatpush.msrb.mxu2 %v708_v7  ;;  %v95_v7 = vld [vmem:[%s2582_s0 + $0x118] sm:$0xff] }
 0x12e   :  { %v1938_v11 = vpop.f32.mrf.mxu1  ;;  %255 = vmatmul.f32.gmra.mxu0 %v93_v47 }
 0x12f   :  { %787 = vmatpush.msrb.mxu2 %v707_v10  ;;  %v2035_v10 = vpop.f32.mrf.mxu2 }
 0x131   :  { %612 = vmatmul.f32.gmra.mxu1 %v447_v37  ;;  %788 = vmatpush.msrb.mxu2 %v706_v31  ;;  %v2037_v37 = vpop.f32.mrf.mxu3 }
 0x133   :  { %789 = vmatpush.msrb.mxu2 %v705_v25  ;;  %v2008_v56 = vpop.f32.mrf.mxu0  ;;  %v96_v25 = vld [vmem:[%s2582_s0 + $0x120] sm:$0xff] }
 0x135   :  { %790 = vmatpush.msrb.mxu2 %v704_v17 }
 0x136   :  { %v1959_v27 = vpop.f32.mrf.mxu1  ;;  %258 = vmatmul.f32.gmra.mxu0 %v94_v63  ;;  %v99_v63 = vld [vmem:[%s2582_s0 + $0x138] sm:$0xff] }
 0x137   :  { %791 = vmatpush.msrb.mxu2 %v703_v13  ;;  %v2049_v17 = vpop.f32.mrf.mxu2 }
 0x139   :  { %816 = vmatpush.msra.mxu2 %v750_v20  ;;  %615 = vmatmul.f32.gmra.mxu1 %v448_v28  ;;  %v2051_v20 = vpop.f32.mrf.mxu3  ;;  %v454_v28 = vld [vmem:[%s2582_s0 + $0x348] sm:$0xff] }
 0x13b   :  { %817 = vmatpush.msra.mxu2 %v749_v26  ;;  %v2025_v49 = vpop.f32.mrf.mxu0 }
 0x13d   :  { %818 = vmatpush.msra.mxu2 %v748_v1 }
 0x13e   :  { %v1978_v35 = vpop.f32.mrf.mxu1  ;;  %261 = vmatmul.f32.gmra.mxu0 %v95_v7 }
 0x13f   :  { %819 = vmatpush.msra.mxu2 %v747_v29  ;;  %v2061_v5 = vpop.f32.mrf.mxu2 }
 0x141   :  { %618 = vmatmul.f32.gmra.mxu1 %v449_v38  ;;  %v2065_v29 = vpop.f32.mrf.mxu3 }
 0x143   :  { %v2039_v15 = vpop.f32.mrf.mxu0 }
 0x146   :  { %v1995_v44 = vpop.f32.mrf.mxu1  ;;  %264 = vmatmul.f32.gmra.mxu0 %v96_v25 }
 0x147   :  { %v2075_v47 = vpop.f32.mrf.mxu2 }
 0x149   :  { %621 = vmatmul.f32.gmra.mxu1 %v450_v45  ;;  %v2083_v2 = vpop.f32.mrf.mxu3 }
 0x14b   :  { %v2053_v13 = vpop.f32.mrf.mxu0 }
 0x14e   :  { %v2012_v58 = vpop.f32.mrf.mxu1  ;;  %267 = vmatmul.f32.gmra.mxu0 %v97_v9 }
 0x14f   :  { %v2090_v25 = vpop.f32.mrf.mxu2 }
 0x151   :  { %624 = vmatmul.f32.gmra.mxu1 %v451_v59  ;;  %v456_v59 = vld [vmem:[%s2582_s0 + $0x358] sm:$0xff] }
 0x153   :  { %v2063_v1 = vpop.f32.mrf.mxu0 }
 0x156   :  { %v2027_v43 = vpop.f32.mrf.mxu1  ;;  %270 = vmatmul.f32.gmra.mxu0 %v98_v4  ;;  %v101_v4 = vld [vmem:[%s2582_s0 + $0x148] sm:$0xff] }
 0x159   :  { %627 = vmatmul.f32.gmra.mxu1 %v452_v6 }
 0x15b   :  { %v2073_v45 = vpop.f32.mrf.mxu0 }
 0x15e   :  { %v2041_v31 = vpop.f32.mrf.mxu1  ;;  %273 = vmatmul.f32.gmra.mxu0 %v99_v63 }
 0x161   :  { %630 = vmatmul.f32.gmra.mxu1 %v453_v19  ;;  %v100_v19 = vld [vmem:[%s2582_s0 + $0x140] sm:$0xff] }
 0x163   :  { %v2085_v6 = vpop.f32.mrf.mxu0 }
 0x166   :  { %v586_v26 = vpop.f32.mrf.mxu1  ;;  %276 = vmatmul.f32.gmra.mxu0 %v100_v19  ;;  %v102_v19 = vld [vmem:[%s2582_s0 + $0x150] sm:$0xff] }
 0x167   :  { %v728_v33 = vmax.f32 %v586_v26, 0.0 }
 0x169   :  { %633 = vmatmul.f32.gmra.mxu1 %v454_v28  ;;  %v2092_v28 = vpop.f32.mrf.mxu3 }
 0x16b   :  { %v2094_v9 = vpop.f32.mrf.mxu0 }
 0x16e   :  { %v589_v38 = vpop.f32.mrf.mxu1  ;;  %279 = vmatmul.f32.gmra.mxu0 %v101_v4  ;;  %v103_v4 = vld [vmem:[%s2582_s0 + $0x158] sm:$0xff] }
 0x16f   :  { %v729_v22 = vmax.f32 %v589_v38, 0.0  ;;  %v720_v38 = vmax.f32 %v1921_v61, 0.0 }
 0x171   :  { %636 = vmatmul.f32.gmra.mxu1 %v455_v14  ;;  %v2101_v63 = vpop.f32.mrf.mxu3 }
 0x173   :  { %v2103_v32 = vpop.f32.mrf.mxu0 }
 0x176   :  { %v592_v52 = vpop.f32.mrf.mxu1  ;;  %282 = vmatmul.f32.gmra.mxu0 %v102_v19 }
 0x177   :  { %v730_v3 = vmax.f32 %v592_v52, 0.0  ;;  %v725_v52 = vmax.f32 %v2012_v58, 0.0 }
 0x179   :  { %639 = vmatmul.f32.gmra.mxu1 %v456_v59  ;;  %v2099_v59 = vpop.f32.mrf.mxu2  ;;  %v2112_v18 = vpop.f32.mrf.mxu3 }
 0x17b   :  { %v2110_v55 = vpop.f32.mrf.mxu0 }
 0x17e   :  { %v595_v7 = vpop.f32.mrf.mxu1  ;;  %285 = vmatmul.f32.gmra.mxu0 %v103_v4 }
 0x17f   :  { %v731_v19 = vmax.f32 %v595_v7, 0.0 }
 0x181   :  { %v2108_v53 = vpop.f32.mrf.mxu2  ;;  %v2121_v12 = vpop.f32.mrf.mxu3 }
 0x182   :  { %v763_v61 = vmax.f32 %v2108_v53, 0.0  ;;  %v758_v53 = vmax.f32 %v2049_v17, 0.0  ;;  %v753_v17 = vmax.f32 %v1947_v16, 0.0 }
 0x183   :  { %v2117_v48 = vpop.f32.mrf.mxu0 }
 0x186   :  { %v598_v14 = vpop.f32.mrf.mxu1 }
 0x187   :  { %v732_v42 = vmax.f32 %v598_v14, 0.0 }
 0x189   :  { %v694_v54 = vpop.f32.mrf.mxu2  ;;  %v2130_v7 = vpop.f32.mrf.mxu3 }
 0x18e   :  { %v601_v39 = vpop.f32.mrf.mxu1 }
 0x18f   :  { %v733_v36 = vmax.f32 %v601_v39, 0.0 }
 0x191   :  { %v697_v39 = vpop.f32.mrf.mxu2  ;;  %v2141_v14 = vpop.f32.mrf.mxu3 }
 0x192   :  { %v765_v4 = vmax.f32 %v697_v39, 0.0 }
 0x196   :  { %v604_v24 = vpop.f32.mrf.mxu1 }
 0x197   :  { %v734_v30 = vmax.f32 %v604_v24, 0.0  ;;  %v727_v24 = vmax.f32 %v2041_v31, 0.0  ;;  %v722_v31 = vmax.f32 %v1959_v27, 0.0  ;;  %v1316_v27 = vld [vmem:[%s2583_s2 + $0x28] sm:$0xff] }
 0x199   :  { %796 = vmatpush.msrb.mxu3 %v734_v30  ;;  %v2124_v30 = vpop.f32.mrf.mxu0  ;;  %v700_v58 = vpop.f32.mrf.mxu2 }
 0x19b   :  { %797 = vmatpush.msrb.mxu3 %v733_v36 }
 0x19d   :  { %798 = vmatpush.msrb.mxu3 %v732_v42  ;;  %v726_v42 = vmax.f32 %v2027_v43, 0.0  ;;  %v721_v43 = vmax.f32 %v1938_v11, 0.0 }
 0x19e   :  { %v2119_v60 = vpop.f32.mrf.mxu1 }
 0x19f   :  { %799 = vmatpush.msrb.mxu3 %v731_v19 }
 0x1a1   :  { %800 = vmatpush.msrb.mxu3 %v730_v3  ;;  %v724_v3 = vmax.f32 %v1995_v44, 0.0  ;;  %v2137_v26 = vpop.f32.mrf.mxu0  ;;  %v766_v44 = vmax.f32 %v700_v58, 0.0 }
 0x1a3   :  { %801 = vmatpush.msrb.mxu3 %v729_v22  ;;  %v723_v22 = vmax.f32 %v1978_v35, 0.0  ;;  %v719_v35 = vmax.f32 %v1902_v51, 0.0  ;;  %v761_v51 = vmax.f32 %v2090_v25, 0.0  ;;  %v757_v25 = vmax.f32 %v2035_v10, 0.0 }
 0x1a4   :  { %v752_v10 = vmax.f32 %v1919_v0, 0.0  ;;  %v378_v0 = vmax.f32 %v2124_v30, 0.0  ;;  %v372_v30 = vmax.f32 %v2073_v45, 0.0  ;;  %v368_v45 = vmax.f32 %v2025_v49, 0.0 }
 0x1a5   :  { %802 = vmatpush.msrb.mxu3 %v728_v33 }
 0x1a6   :  { %v2126_v36 = vpop.f32.mrf.mxu1 }
 0x1a7   :  { %803 = vmatpush.msrb.mxu3 %v727_v24  ;;  %v764_v24 = vmax.f32 %v694_v54, 0.0 }
 0x1a9   :  { %804 = vmatpush.msrb.mxu3 %v726_v42  ;;  %v250_v11 = vpop.f32.mrf.mxu0  ;;  %v762_v42 = vmax.f32 %v2099_v59, 0.0 }
 0x1ab   :  { %805 = vmatpush.msrb.mxu3 %v725_v52  ;;  %v2151_v52 = vpop.f32.mrf.mxu3 }
 0x1ad   :  { %806 = vmatpush.msrb.mxu3 %v724_v3  ;;  %v760_v3 = vmax.f32 %v2075_v47, 0.0  ;;  %v755_v47 = vmax.f32 %v1991_v40, 0.0  ;;  %v1318_v40 = vld [vmem:[%s2583_s2 + $0x38] sm:$0xff] }
 0x1ae   :  { %v2134_v33 = vpop.f32.mrf.mxu1 }
 0x1af   :  { %807 = vmatpush.msrb.mxu3 %v723_v22  ;;  %v759_v22 = vmax.f32 %v2061_v5, 0.0  ;;  %v754_v5 = vmax.f32 %v1971_v23, 0.0 }
 0x1b1   :  { %808 = vmatpush.msrb.mxu3 %v722_v31  ;;  %v2157_v54 = vpop.f32.mrf.mxu0 }
 0x1b3   :  { %809 = vmatpush.msrb.mxu3 %v721_v43  ;;  %v2163_v31 = vpop.f32.mrf.mxu3  ;;  %v756_v43 = vmax.f32 %v2010_v57, 0.0  ;;  %v380_v57 = vmax.f32 %v250_v11, 0.0 }
 0x1b5   :  { %810 = vmatpush.msrb.mxu3 %v720_v38 }
 0x1b6   :  { %v2144_v19 = vpop.f32.mrf.mxu1 }
 0x1b7   :  { %811 = vmatpush.msrb.mxu3 %v719_v35  ;;  %v751_v35 = vmax.f32 %v1900_v50, 0.0 }
 0x1b8   :  { %812 = vmatmul.f32.vlgmr.msrb.gmra.mxu3 %v1316_v27  ;;  %v377_v27 = vmax.f32 %v2117_v48, 0.0 }
 0x1b9   :  { %836 = vmatpush.msra.mxu3 %v766_v44  ;;  %v2168_v58 = vpop.f32.mrf.mxu0 }
 0x1bb   :  { %837 = vmatpush.msra.mxu3 %v765_v4  ;;  %v2174_v44 = vpop.f32.mrf.mxu3  ;;  %v379_v4 = vmax.f32 %v2137_v26, 0.0  ;;  %v374_v26 = vmax.f32 %v2094_v9, 0.0  ;;  %v369_v9 = vmax.f32 %v2039_v15, 0.0 }
 0x1bd   :  { %838 = vmatpush.msra.mxu3 %v764_v24  ;;  %v376_v24 = vmax.f32 %v2110_v55, 0.0  ;;  %v371_v55 = vmax.f32 %v2063_v1, 0.0  ;;  %v367_v1 = vmax.f32 %v2008_v56, 0.0 }
 0x1be   :  { %v2154_v39 = vpop.f32.mrf.mxu1 }
 0x1bf   :  { %839 = vmatpush.msra.mxu3 %v763_v61  ;;  %v375_v61 = vmax.f32 %v2103_v32, 0.0  ;;  %v1315_v32 = vld [vmem:[%s2583_s2 + $0x20] sm:$0xff] }
 0x1c0   :  { %792 = vmatmul.f32.vlgmr.msrb.gmra.mxu2 %v1315_v32  ;;  %v2618_v32 = vld [vmem:[#allocation8_spill] sm:$0xff] }
 0x1c1   :  { %840 = vmatpush.msra.mxu3 %v762_v42  ;;  %v2184_v16 = vpop.f32.mrf.mxu0 }
 0x1c3   :  { %841 = vmatpush.msra.mxu3 %v761_v51  ;;  %v340_v50 = vpop.f32.mrf.mxu3  ;;  %v373_v51 = vmax.f32 %v2085_v6, 0.0 }
 0x1c5   :  { %842 = vmatpush.msra.mxu3 %v760_v3 }
 0x1c6   :  { %v2161_v59 = vpop.f32.mrf.mxu1 }
 0x1c7   :  { %843 = vmatpush.msra.mxu3 %v759_v22  ;;  %v370_v22 = vmax.f32 %v2053_v13, 0.0  ;;  %v366_v13 = vmax.f32 %v1993_v41, 0.0  ;;  %v408_v41 = vmax.f32 %v2163_v31, 0.0  ;;  %v405_v31 = vmax.f32 %v2130_v7, 0.0 }
 0x1c8   :  { %v737_v7 = vmax.f32 %v2134_v33, 0.0  ;;  %v1317_v33 = vld [vmem:[%s2583_s2 + $0x30] sm:$0xff] }
 0x1c9   :  { %844 = vmatpush.msra.mxu3 %v758_v53  ;;  %v2191_v42 = vpop.f32.mrf.mxu0 }
 0x1cb   :  { %845 = vmatpush.msra.mxu3 %v757_v25  ;;  %v343_v48 = vpop.f32.mrf.mxu3 }
 0x1cd   :  { %846 = vmatpush.msra.mxu3 %v756_v43 }
 0x1ce   :  { %v2171_v38 = vpop.f32.mrf.mxu1 }
 0x1cf   :  { %847 = vmatpush.msra.mxu3 %v755_v47  ;;  %v365_v47 = vmax.f32 %v1976_v34, 0.0  ;;  %v407_v34 = vmax.f32 %v2151_v52, 0.0  ;;  %v740_v52 = vmax.f32 %v2161_v59, 0.0 }
 0x1d1   :  { %848 = vmatpush.msra.mxu3 %v754_v5  ;;  %v2201_v6 = vpop.f32.mrf.mxu0  ;;  %v411_v5 = vmax.f32 %v343_v48, 0.0 }
 0x1d3   :  { %849 = vmatpush.msra.mxu3 %v753_v17  ;;  %v346_v25 = vpop.f32.mrf.mxu3  ;;  %v410_v17 = vmax.f32 %v340_v50, 0.0  ;;  %v404_v50 = vmax.f32 %v2121_v12, 0.0  ;;  %v401_v12 = vmax.f32 %v2092_v28, 0.0  ;;  %v363_v28 = vmax.f32 %v1935_v8, 0.0  ;;  %v2613_v8 = vld [vmem:[#allocation13_spill] sm:$0xff] }
 0x1d4   :  { %v412_v43 = vmax.f32 %v346_v25, 0.0  ;;  %v2621_v25 = vld [vmem:[#allocation5_spill] sm:$0xff] }
 0x1d5   :  { %850 = vmatpush.msra.mxu3 %v752_v10 }
 0x1d6   :  { %v2181_v23 = vpop.f32.mrf.mxu1 }
 0x1d7   :  { %851 = vmatpush.msra.mxu3 %v751_v35 }
 0x1d8   :  { %852 = vmatmul.f32.vlgmr.msra.gmra.mxu3 %v1318_v40 }
 0x1d9   :  { %876 = vmatpush.msrb.mxu3 %v380_v57  ;;  %v2207_v15 = vpop.f32.mrf.mxu0  ;;  %v409_v57 = vmax.f32 %v2174_v44, 0.0 }
 0x1db   :  { %877 = vmatpush.msrb.mxu3 %v379_v4  ;;  %v406_v4 = vmax.f32 %v2141_v14, 0.0  ;;  %v739_v14 = vmax.f32 %v2154_v39, 0.0  ;;  %v736_v39 = vmax.f32 %v2126_v36, 0.0  ;;  %v398_v36 = vmax.f32 %v2051_v20, 0.0 }
 0x1dc   :  { %v360_v20 = vmax.f32 %v2613_v8, 0.0  ;;  %v1327_v8 = vld [vmem:[%s2584_s3 + $0xc0] sm:$0xff] }
 0x1dd   :  { %878 = vmatpush.msrb.mxu3 %v378_v0  ;;  %v742_v0 = vmax.f32 %v2181_v23, 0.0  ;;  %v403_v23 = vmax.f32 %v2112_v18, 0.0  ;;  %v400_v18 = vmax.f32 %v2083_v2, 0.0 }
 0x1de   :  { %v631_v11 = vpop.f32.mrf.mxu1 }
 0x1df   :  { %879 = vmatpush.msrb.mxu3 %v377_v27  ;;  %v743_v40 = vmax.f32 %v631_v11, 0.0  ;;  %v741_v27 = vmax.f32 %v2171_v38, 0.0  ;;  %v402_v38 = vmax.f32 %v2101_v63, 0.0  ;;  %v364_v63 = vmax.f32 %v1955_v21, 0.0 }
 0x1e0   :  { %v399_v11 = vmax.f32 %v2065_v29, 0.0  ;;  %v362_v21 = vmax.f32 %v1916_v62, 0.0  ;;  %v397_v29 = vmax.f32 %v2037_v37, 0.0 }
 0x1e1   :  { %880 = vmatpush.msrb.mxu3 %v376_v24  ;;  %v2214_v44 = vpop.f32.mrf.mxu0  ;;  %v738_v24 = vmax.f32 %v2144_v19, 0.0  ;;  %v735_v19 = vmax.f32 %v2119_v60, 0.0  ;;  %v768_v60 = vld [vmem:[%s2583_s2 + $0x8] sm:$0xff] }
 0x1e3   :  { %881 = vmatpush.msrb.mxu3 %v375_v61  ;;  %v361_v61 = vmax.f32 %v1898_v46, 0.0  ;;  %v355_v46 = vmax.f32 %v2618_v32, 0.0  ;;  %v940_v32 = vld [vmem:[%s2584_s3 + $0x18] sm:$0xff] }
 0x1e5   :  { %882 = vmatpush.msrb.mxu3 %v374_v26  ;;  %v2614_v26 = vld [vmem:[#allocation12_spill] sm:$0xff] }
 0x1e6   :  { %v634_v3 = vpop.f32.mrf.mxu1 }
 0x1e7   :  { %883 = vmatpush.msrb.mxu3 %v373_v51  ;;  %v744_v35 = vmax.f32 %v634_v3, 0.0  ;;  %v359_v51 = vmax.f32 %v2614_v26, 0.0  ;;  %v2616_v3 = vld [vmem:[#allocation10_spill] sm:$0xff]  ;;  %v1326_v26 = vld [vmem:[%s2584_s3 + $0xb8] sm:$0xff] }
 0x1e8   :  { %v357_v62 = vmax.f32 %v2616_v3, 0.0  ;;  %v1324_v3 = vld [vmem:[%s2584_s3 + $0xa8] sm:$0xff] }
 0x1e9   :  { %884 = vmatpush.msrb.mxu3 %v372_v30  ;;  %v2225_v59 = vpop.f32.mrf.mxu0  ;;  %v2615_v30 = vld [vmem:[#allocation11_spill] sm:$0xff] }
 0x1ea   :  { %v358_v48 = vmax.f32 %v2615_v30, 0.0  ;;  %v1325_v30 = vld [vmem:[%s2584_s3 + $0xb0] sm:$0xff] }
 0x1eb   :  { %885 = vmatpush.msrb.mxu3 %v371_v55  ;;  %v2617_v55 = vld [vmem:[#allocation9_spill] sm:$0xff] }
 0x1ed   :  { %886 = vmatpush.msrb.mxu3 %v370_v22  ;;  %v356_v22 = vmax.f32 %v2617_v55, 0.0  ;;  %v941_v55 = vld [vmem:[%s2584_s3 + $0x20] sm:$0xff] }
 0x1ee   :  { %v637_v53 = vpop.f32.mrf.mxu1 }
 0x1ef   :  { %887 = vmatpush.msrb.mxu3 %v369_v9  ;;  %v745_v56 = vmax.f32 %v637_v53, 0.0  ;;  %v2619_v9 = vld [vmem:[#allocation7_spill] sm:$0xff]  ;;  %v2620_v53 = vld [vmem:[#allocation6_spill] sm:$0xff] }
 0x1f1   :  { %888 = vmatpush.msrb.mxu3 %v368_v45  ;;  %v277_v2 = vpop.f32.mrf.mxu0  ;;  %v354_v45 = vmax.f32 %v2619_v9, 0.0  ;;  %v939_v9 = vld [vmem:[%s2584_s3 + $0x10] sm:$0xff] }
 0x1f3   :  { %889 = vmatpush.msrb.mxu3 %v367_v1  ;;  %v353_v1 = vmax.f32 %v2620_v53, 0.0  ;;  %v938_v53 = vld [vmem:[%s2584_s3 + $0x8] sm:$0xff] }
 0x1f5   :  { %890 = vmatpush.msrb.mxu3 %v366_v13  ;;  %v352_v13 = vmax.f32 %v2621_v25, 0.0  ;;  %v937_v25 = vld [vmem:[%s2584_s3] sm:$0xff] }
 0x1f6   :  { %v640_v10 = vpop.f32.mrf.mxu1 }
 0x1f7   :  { %891 = vmatpush.msrb.mxu3 %v365_v47  ;;  %v746_v49 = vmax.f32 %v640_v10, 0.0  ;;  %v2622_v47 = vld [vmem:[#allocation4_spill] sm:$0xff] }
 0x1f8   :  { %892 = vmatmul.f32.vlgmr.msrb.gmra.mxu3 %v768_v60  ;;  %v948_v60 = vld [vmem:[%s2584_s3 + $0x58] sm:$0xff] }
 0x1f9   :  { %916 = vmatpush.msra.mxu3 %v412_v43  ;;  %820 = vmatpush.msra.mxu2 %v746_v49  ;;  %v280_v37 = vpop.f32.mrf.mxu0  ;;  %v2624_v49 = vld [vmem:[#allocation2_spill] sm:$0xff] }
 0x1fb   :  { %917 = vmatpush.msra.mxu3 %v411_v5  ;;  %821 = vmatpush.msra.mxu2 %v745_v56  ;;  %v351_v5 = vmax.f32 %v2622_v47, 0.0  ;;  %v767_v56 = vld [vmem:[%s2583_s2] sm:$0xff]  ;;  %v1039_v47 = vld [vmem:[%s2585_s5 + $0x78] sm:$0xff] }
 0x1fd   :  { %918 = vmatpush.msra.mxu3 %v410_v17  ;;  %822 = vmatpush.msra.mxu2 %v744_v35  ;;  %v2623_v17 = vld [vmem:[#allocation3_spill] sm:$0xff] }
 0x1fe   :  { %v350_v10 = vmax.f32 %v2623_v17, 0.0  ;;  %v1037_v17 = vld [vmem:[%s2585_s5 + $0x68] sm:$0xff] }
 0x1ff   :  { %919 = vmatpush.msra.mxu3 %v409_v57  ;;  %823 = vmatpush.msra.mxu2 %v743_v40  ;;  %v349_v57 = vmax.f32 %v2624_v49, 0.0  ;;  %v2626_v40 = vld [vmem:[#allocation16_spill] sm:$0xff]  ;;  %v1035_v49 = vld [vmem:[%s2585_s5 + $0x58] sm:$0xff] }
 0x201   :  { %920 = vmatpush.msra.mxu3 %v408_v41  ;;  %824 = vmatpush.msra.mxu2 %v742_v0  ;;  %v283_v43 = vpop.f32.mrf.mxu0  ;;  %v2625_v41 = vld [vmem:[#allocation17_spill] sm:$0xff] }
 0x202   :  { %v396_v35 = vmax.f32 %v2625_v41, 0.0 }
 0x203   :  { %921 = vmatpush.msra.mxu3 %v407_v34  ;;  %825 = vmatpush.msra.mxu2 %v741_v27  ;;  %v770_v34 = vld [vmem:[%s2583_s2 + $0x18] sm:$0xff]  ;;  %v2627_v27 = vld [vmem:[#allocation15_spill] sm:$0xff] }
 0x205   :  { %922 = vmatpush.msra.mxu3 %v406_v4  ;;  %826 = vmatpush.msra.mxu2 %v740_v52  ;;  %v395_v4 = vmax.f32 %v2626_v40, 0.0  ;;  %v2628_v52 = vld [vmem:[#allocation14_spill] sm:$0xff] }
 0x206   :  { %v1032_v40 = vld [vmem:[%s2585_s5 + $0x40] sm:$0xff] }
 0x207   :  { %923 = vmatpush.msra.mxu3 %v405_v31  ;;  %827 = vmatpush.msra.mxu2 %v739_v14  ;;  %v394_v31 = vmax.f32 %v2627_v27, 0.0  ;;  %v1031_v27 = vld [vmem:[%s2585_s5 + $0x38] sm:$0xff] }
 0x209   :  { %924 = vmatpush.msra.mxu3 %v404_v50  ;;  %828 = vmatpush.msra.mxu2 %v738_v24  ;;  %v286_v0 = vpop.f32.mrf.mxu0  ;;  %v393_v50 = vmax.f32 %v2628_v52, 0.0  ;;  %v390_v24 = vmax.f32 %v280_v37, 0.0  ;;  %v1323_v37 = vld [vmem:[%s2584_s3 + $0xa0] sm:$0xff] }
 0x20a   :  { %v392_v14 = vmax.f32 %v286_v0, 0.0 }
 0x20b   :  { %925 = vmatpush.msra.mxu3 %v403_v23  ;;  %829 = vmatpush.msra.mxu2 %v737_v7  ;;  %v391_v23 = vmax.f32 %v283_v43, 0.0  ;;  %v388_v7 = vmax.f32 %v2225_v59, 0.0  ;;  %v381_v59 = vmax.f32 %v2157_v54, 0.0  ;;  %v951_v54 = vld [vmem:[%s2584_s3 + $0x70] sm:$0xff] }
 0x20d   :  { %926 = vmatpush.msra.mxu3 %v402_v38  ;;  %830 = vmatpush.msra.mxu2 %v736_v39  ;;  %v389_v38 = vmax.f32 %v277_v2, 0.0  ;;  %v386_v39 = vmax.f32 %v2207_v15, 0.0  ;;  %v769_v15 = vld [vmem:[%s2583_s2 + $0x10] sm:$0xff]  ;;  %v1328_v2 = vld [vmem:[%s2584_s3 + $0xc8] sm:$0xff] }
 0x20f   :  { %927 = vmatpush.msra.mxu3 %v401_v12  ;;  %831 = vmatpush.msra.mxu2 %v735_v19  ;;  %v387_v12 = vmax.f32 %v2214_v44, 0.0  ;;  %v384_v19 = vmax.f32 %v2191_v42, 0.0  ;;  %v1334_v42 = vld [vmem:[%s2584_s3 + $0xf8] sm:$0xff]  ;;  %v950_v44 = vld [vmem:[%s2584_s3 + $0x68] sm:$0xff] }
 0x210   :  { %832 = vmatmul.f32.vlgmr.msra.gmra.mxu2 %v1317_v33  ;;  %v1331_v33 = vld [vmem:[%s2584_s3 + $0xe0] sm:$0xff] }
 0x211   :  { %928 = vmatpush.msra.mxu3 %v400_v18  ;;  %856 = vmatpush.msrb.mxu2 %v364_v63  ;;  %v385_v18 = vmax.f32 %v2201_v6, 0.0  ;;  %v383_v63 = vmax.f32 %v2184_v16, 0.0  ;;  %v952_v16 = vld [vmem:[%s2584_s3 + $0x78] sm:$0xff]  ;;  %v1332_v6 = vld [vmem:[%s2584_s3 + $0xe8] sm:$0xff] }
 0x213   :  { %929 = vmatpush.msra.mxu3 %v399_v11  ;;  %857 = vmatpush.msrb.mxu2 %v363_v28  ;;  %v382_v11 = vmax.f32 %v2168_v58, 0.0  ;;  %v1333_v58 = vld [vmem:[%s2584_s3 + $0xf0] sm:$0xff]  ;;  %v949_v28 = vld [vmem:[%s2584_s3 + $0x60] sm:$0xff] }
 0x215   :  { %930 = vmatpush.msra.mxu3 %v398_v36  ;;  %858 = vmatpush.msrb.mxu2 %v362_v21  ;;  %v1330_v36 = vld [vmem:[%s2584_s3 + $0xd8] sm:$0xff]  ;;  %v1329_v21 = vld [vmem:[%s2584_s3 + $0xd0] sm:$0xff] }
 0x217   :  { %931 = vmatpush.msra.mxu3 %v397_v29  ;;  %859 = vmatpush.msrb.mxu2 %v361_v61  ;;  %v947_v29 = vld [vmem:[%s2584_s3 + $0x50] sm:$0xff]  ;;  %v946_v61 = vld [vmem:[%s2584_s3 + $0x48] sm:$0xff] }
 0x218   :  { %932 = vmatmul.f32.vlgmr.msra.gmra.mxu3 %v770_v34  ;;  %v1033_v34 = vld [vmem:[%s2585_s5 + $0x48] sm:$0xff] }
 0x219   :  { %860 = vmatpush.msrb.mxu2 %v360_v20  ;;  %991 = vmatpush.msrb.mxu3 %v952_v16  ;;  %v945_v20 = vld [vmem:[%s2584_s3 + $0x40] sm:$0xff] }
 0x21b   :  { %861 = vmatpush.msrb.mxu2 %v359_v51  ;;  %992 = vmatpush.msrb.mxu3 %v951_v54  ;;  %v944_v51 = vld [vmem:[%s2584_s3 + $0x38] sm:$0xff]  ;;  %v1026_v54 = vld [vmem:[%s2585_s5 + $0x10] sm:$0xff] }
 0x21d   :  { %862 = vmatpush.msrb.mxu2 %v358_v48  ;;  %993 = vmatpush.msrb.mxu3 %v950_v44  ;;  %v943_v48 = vld [vmem:[%s2584_s3 + $0x30] sm:$0xff]  ;;  %v1024_v44 = vld [vmem:[%s2585_s5] sm:$0xff] }
 0x21f   :  { %863 = vmatpush.msrb.mxu2 %v357_v62  ;;  %994 = vmatpush.msrb.mxu3 %v949_v28  ;;  %v942_v62 = vld [vmem:[%s2584_s3 + $0x28] sm:$0xff]  ;;  %v1370_v28 = vld [vmem:[%s2586_s4 + $0x1] ss:$0 sm:$0xff] }
 0x221   :  { %864 = vmatpush.msrb.mxu2 %v356_v22  ;;  %995 = vmatpush.msrb.mxu3 %v948_v60  ;;  %v1322_v22 = vld [vmem:[%s2584_s3 + $0x98] sm:$0xff] }
 0x223   :  { %865 = vmatpush.msrb.mxu2 %v355_v46  ;;  %996 = vmatpush.msrb.mxu3 %v947_v29  ;;  %v1321_v46 = vld [vmem:[%s2584_s3 + $0x90] sm:$0xff] }
 0x225   :  { %866 = vmatpush.msrb.mxu2 %v354_v45  ;;  %997 = vmatpush.msrb.mxu3 %v946_v61  ;;  %v1320_v45 = vld [vmem:[%s2584_s3 + $0x88] sm:$0xff] }
 0x227   :  { %867 = vmatpush.msrb.mxu2 %v353_v1  ;;  %998 = vmatpush.msrb.mxu3 %v945_v20  ;;  %v1319_v1 = vld [vmem:[%s2584_s3 + $0x80] sm:$0xff] }
 0x228   :  { %v1371_v20 = vld [vmem:[%s2587_s6] ss:$0 sm:$0xff] }
 0x229   :  { %868 = vmatpush.msrb.mxu2 %v352_v13  ;;  %999 = vmatpush.msrb.mxu3 %v944_v51 }
 0x22b   :  { %869 = vmatpush.msrb.mxu2 %v351_v5  ;;  %1000 = vmatpush.msrb.mxu3 %v943_v48  ;;  %v1038_v5 = vld [vmem:[%s2585_s5 + $0x70] sm:$0xff] }
 0x22d   :  { %870 = vmatpush.msrb.mxu2 %v350_v10  ;;  %1001 = vmatpush.msrb.mxu3 %v942_v62  ;;  %v1036_v10 = vld [vmem:[%s2585_s5 + $0x60] sm:$0xff] }
 0x22f   :  { %871 = vmatpush.msrb.mxu2 %v349_v57  ;;  %1002 = vmatpush.msrb.mxu3 %v941_v55  ;;  %v1034_v57 = vld [vmem:[%s2585_s5 + $0x50] sm:$0xff] }
 0x230   :  { %872 = vmatmul.f32.vlgmr.msrb.gmra.mxu2 %v767_v56 }
 0x231   :  { %896 = vmatpush.msra.mxu2 %v396_v35  ;;  %1003 = vmatpush.msrb.mxu3 %v940_v32 }
 0x233   :  { %897 = vmatpush.msra.mxu2 %v395_v4  ;;  %1004 = vmatpush.msrb.mxu3 %v939_v9  ;;  %v50_v4 = vlaneseq }
 0x235   :  { %898 = vmatpush.msra.mxu2 %v394_v31  ;;  %1005 = vmatpush.msrb.mxu3 %v938_v53  ;;  %v1030_v31 = vld [vmem:[%s2585_s5 + $0x30] sm:$0xff] }
 0x237   :  { %899 = vmatpush.msra.mxu2 %v393_v50  ;;  %1006 = vmatpush.msrb.mxu3 %v937_v25  ;;  %v1152_v25 = vld [vmem:[%s2593_s9 + $0x70] sm:$0xff] }
 0x239   :  { %900 = vmatpush.msra.mxu2 %v392_v14  ;;  %v51_v14 = vshrl.u32 %v50_v4, 7 }
 0x23b   :  { %901 = vmatpush.msra.mxu2 %v391_v23  ;;  %v813_v43 = vpop.f32.mrf.mxu3  ;;  %vm55_vm0 = vcmp.ge.s32.totalorder %v51_v14, 2  ;;  %vm56_vm1 = vcmp.lt.s32.totalorder %v51_v14, 4  ;;  %vm52_vm2 = vcmp.lt.s32.totalorder %v51_v14, 2 }
 0x23c   :  { %vm57_vm3 = vmand %vm55_vm0, %vm56_vm1 }
 0x23d   :  { %902 = vmatpush.msra.mxu2 %v390_v24  ;;  %v1029_v24 = vld [vmem:[%s2585_s5 + $0x28] sm:$0xff] }
 0x23f   :  { %903 = vmatpush.msra.mxu2 %v389_v38 }
 0x241   :  { %904 = vmatpush.msra.mxu2 %v388_v7  ;;  %v1028_v7 = vld [vmem:[%s2585_s5 + $0x20] sm:$0xff] }
 0x243   :  { %905 = vmatpush.msra.mxu2 %v387_v12  ;;  %v793_v13 = vpop.f32.mrf.mxu2 }
 0x244   :  { %v814_v35 = vadd.f32 %v813_v43, %v793_v13 }
 0x245   :  { %906 = vmatpush.msra.mxu2 %v386_v39 }
 0x247   :  { %907 = vmatpush.msra.mxu2 %v385_v18 }
 0x249   :  { %908 = vmatpush.msra.mxu2 %v384_v19 }
 0x24b   :  { %909 = vmatpush.msra.mxu2 %v383_v63  ;;  %v1386_v63 = vmov 0.0  }
 0x24d   :  { %910 = vmatpush.msra.mxu2 %v382_v11  ;;  %v2409_v11 = vsel %vm52_vm2, 1.0, %v1386_v63 }
 0x24f   :  { %911 = vmatpush.msra.mxu2 %v381_v59  ;;  %v2411_v59 = vsel %vm57_vm3, 1.0, %v1386_v63 }
 0x250   :  { %912 = vmatmul.f32.vlgmr.msra.gmra.mxu2 %v769_v15 }
 0x251   :  { %971 = vmatpush.msrb.mxu2 %v1334_v42 }
 0x253   :  { %972 = vmatpush.msrb.mxu2 %v1333_v58  ;;  %v1027_v58 = vld [vmem:[%s2585_s5 + $0x18] sm:$0xff] }
 0x255   :  { %973 = vmatpush.msrb.mxu2 %v1332_v6  ;;  %v1025_v6 = vld [vmem:[%s2585_s5 + $0x8] sm:$0xff] }
 0x257   :  { %974 = vmatpush.msrb.mxu2 %v1331_v33  ;;  %v1369_v33 = vld [vmem:[%s2586_s4] ss:$0 sm:$0xff] }
 0x259   :  { %975 = vmatpush.msrb.mxu2 %v1330_v36  ;;  %v1015_v36 = vmul.f32 %v1369_v33, %v2409_v11 }
 0x25b   :  { %976 = vmatpush.msrb.mxu2 %v1329_v21  ;;  %v853_v41 = vpop.f32.mrf.mxu3 }
 0x25d   :  { %977 = vmatpush.msrb.mxu2 %v1328_v2  ;;  %v1022_v2 = vmul.f32 %v1370_v28, %v2411_v59 }
 0x25f   :  { %978 = vmatpush.msrb.mxu2 %v1327_v8 }
 0x261   :  { %979 = vmatpush.msrb.mxu2 %v1326_v26 }
 0x263   :  { %980 = vmatpush.msrb.mxu2 %v1325_v30 }
 0x265   :  { %981 = vmatpush.msrb.mxu2 %v1324_v3 }
 0x267   :  { %982 = vmatpush.msrb.mxu2 %v1323_v37 }
 0x269   :  { %983 = vmatpush.msrb.mxu2 %v1322_v22 }
 0x26b   :  { %984 = vmatpush.msrb.mxu2 %v1321_v46 }
 0x26d   :  { %985 = vmatpush.msrb.mxu2 %v1320_v45  ;;  %v1153_v45 = vld [vmem:[%s2593_s9 + $0x78] sm:$0xff] }
 0x26e   :  { %1158 = vmatpush.msra.mxu3 %v1153_v45  ;;  %v1372_v45 = vld [vmem:[%s2588_s7] ss:$0 sm:$0xff] }
 0x26f   :  { %986 = vmatpush.msrb.mxu2 %v1319_v1 }
 0x270   :  { %1159 = vmatpush.msra.mxu3 %v1152_v25 }
 0x271   :  { %1044 = vmatpush.msra.mxu2 %v1039_v47  ;;  %v1151_v47 = vld [vmem:[%s2593_s9 + $0x68] sm:$0xff] }
 0x272   :  { %1160 = vmatpush.msra.mxu3 %v1151_v47  ;;  %v1374_v47 = vld [vmem:[%s2590_s10] ss:$0 sm:$0xff] }
 0x273   :  { %1045 = vmatpush.msra.mxu2 %v1038_v5 }
 0x275   :  { %1046 = vmatpush.msra.mxu2 %v1037_v17 }
 0x277   :  { %1047 = vmatpush.msra.mxu2 %v1036_v10  ;;  %v1150_v10 = vld [vmem:[%s2593_s9 + $0x60] sm:$0xff] }
 0x278   :  { %1161 = vmatpush.msra.mxu3 %v1150_v10 }
 0x279   :  { %1048 = vmatpush.msra.mxu2 %v1035_v49 }
 0x27b   :  { %1049 = vmatpush.msra.mxu2 %v1034_v57  ;;  %v893_v50 = vpop.f32.mrf.mxu3 }
 0x27d   :  { %1050 = vmatpush.msra.mxu2 %v1033_v34 }
 0x27f   :  { %1051 = vmatpush.msra.mxu2 %v1032_v40  ;;  %v1147_v40 = vld [vmem:[%s2593_s9 + $0x48] sm:$0xff] }
 0x281   :  { %1052 = vmatpush.msra.mxu2 %v1031_v27 }
 0x283   :  { %1053 = vmatpush.msra.mxu2 %v1030_v31 }
 0x285   :  { %1054 = vmatpush.msra.mxu2 %v1029_v24 }
 0x287   :  { %1055 = vmatpush.msra.mxu2 %v1028_v7  ;;  %v1143_v7 = vld [vmem:[%s2593_s9 + $0x28] sm:$0xff] }
 0x289   :  { %1056 = vmatpush.msra.mxu2 %v1027_v58  ;;  %v1140_v58 = vld [vmem:[%s2593_s9 + $0x10] sm:$0xff] }
 0x28b   :  { %1057 = vmatpush.msra.mxu2 %v1026_v54 }
 0x28d   :  { %1058 = vmatpush.msra.mxu2 %v1025_v6 }
 0x28f   :  { %1059 = vmatpush.msra.mxu2 %v1024_v44  ;;  %v1139_v44 = vld [vmem:[%s2593_s9 + $0x8] sm:$0xff] }
 0x293   :  { %v833_v56 = vpop.f32.mrf.mxu2 }
 0x294   :  { %v834_v0 = vadd.f32 %v833_v56, %v814_v35  ;;  %v1149_v56 = vld [vmem:[%s2593_s9 + $0x58] sm:$0xff]  ;;  %v1148_v35 = vld [vmem:[%s2593_s9 + $0x50] sm:$0xff] }
 0x295   :  { %1162 = vmatpush.msra.mxu3 %v1149_v56 }
 0x296   :  { %v854_v23 = vadd.f32 %v853_v41, %v834_v0  ;;  %v1146_v0 = vld [vmem:[%s2593_s9 + $0x40] sm:$0xff] }
 0x297   :  { %1163 = vmatpush.msra.mxu3 %v1148_v35 }
 0x299   :  { %1164 = vmatpush.msra.mxu3 %v1147_v40 }
 0x29b   :  { %v933_v18 = vpop.f32.mrf.mxu3  ;;  %1165 = vmatpush.msra.mxu3 %v1146_v0 }
 0x2b3   :  { %v873_v52 = vpop.f32.mrf.mxu2 }
 0x2b4   :  { %v874_v38 = vadd.f32 %v873_v52, %v854_v23  ;;  %v1145_v52 = vld [vmem:[%s2593_s9 + $0x38] sm:$0xff]  ;;  %v1144_v23 = vld [vmem:[%s2593_s9 + $0x30] sm:$0xff] }
 0x2b5   :  { %1166 = vmatpush.msra.mxu3 %v1145_v52 }
 0x2b6   :  { %v894_v12 = vadd.f32 %v893_v50, %v874_v38 }
 0x2b7   :  { %1167 = vmatpush.msra.mxu3 %v1144_v23 }
 0x2b9   :  { %1168 = vmatpush.msra.mxu3 %v1143_v7 }
 0x2d3   :  { %v913_v39 = vpop.f32.mrf.mxu2 }
 0x2d4   :  { %v914_v19 = vadd.f32 %v913_v39, %v894_v12 }
 0x2d6   :  { %v934_v15 = vadd.f32 %v933_v18, %v914_v19  ;;  %v1142_v18 = vld [vmem:[%s2593_s9 + $0x20] sm:$0xff] }
 0x2d7   :  { %1169 = vmatpush.msra.mxu3 %v1142_v18 }
 0x2d8   :  { %v936_v42 = vmul.f32 %v2409_v11, %v934_v15  ;;  %v953_v16 = vmul.f32 %v2411_v59, %v934_v15  ;;  %v1141_v15 = vld [vmem:[%s2593_s9 + $0x18] sm:$0xff] }
 0x2d9   :  { %1170 = vmatpush.msra.mxu3 %v1141_v15  ;;  %v1262_v15 = vld [vmem:[%s2595_s13 + $0x50] sm:$0xff] }
 0x2da   :  { %987 = vmatmul.f32.vlgmr.msrb.gmra.mxu2 %v953_v16  ;;  %1007 = vmatmul.f32.vlgmr.msrb.gmra.mxu3 %v936_v42 }
 0x2db   :  { %1171 = vmatpush.msra.mxu3 %v1140_v58 }
 0x2dd   :  { %1172 = vmatpush.msra.mxu3 %v1139_v44 }
 0x35d   :  { %v988_v60 = vpop.f32.mrf.mxu2  ;;  %v1008_v21 = vpop.f32.mrf.mxu3 }
 0x35e   :  { %v1009_v29 = vadd.f32 %v1008_v21, %v988_v60 }
 0x360   :  { %v1016_v61 = vadd.f32 %v1015_v36, %v1009_v29  ;;  %v1138_v36 = vld [vmem:[%s2593_s9] sm:$0xff] }
 0x361   :  { %1173 = vmatpush.msra.mxu3 %v1138_v36 }
 0x362   :  { %v1023_v8 = vadd.f32 %v1022_v2, %v1016_v61 }
 0x364   :  { %1060 = vmatmul.f32.vlgmr.msra.gmra.mxu2 %v1023_v8 }
 0x3e7   :  { %v1061_v26 = vpop.f32.mrf.mxu2 }
 0x3e8   :  { %v1062_v51 = vadd.f32 %v1371_v20, %v1061_v26 }
 0x3ea   :  { %v1064_v30 = vmul.f32 %v2409_v11, %v1062_v51  ;;  %v1072_v48 = vmul.f32 %v2411_v59, %v1062_v51 }
 0x3ec   :  { %v1065_v3 = vrot.slane %v1064_v30, 4  ;;  %v1073_v62 = vrot.slane %v1072_v48, 4 }
 0x3ee   :  { %v1066_v37 = vadd.f32 %v1065_v3, %v1064_v30  ;;  %v1074_v55 = vadd.f32 %v1073_v62, %v1072_v48 }
 0x3f0   :  { %v1067_v22 = vrot.slane %v1066_v37, 2  ;;  %v1075_v32 = vrot.slane %v1074_v55, 2 }
 0x3f2   :  { %v1068_v46 = vadd.f32 %v1067_v22, %v1066_v37  ;;  %v1076_v9 = vadd.f32 %v1075_v32, %v1074_v55 }
 0x3f4   :  { %v1069_v53 = vrot.slane %v1068_v46, 1  ;;  %v1077_v1 = vrot.slane %v1076_v9, 1 }
 0x3f6   :  { %v1070_v13 = vadd.f32 %v1069_v53, %v1068_v46  ;;  %v1078_v43 = vadd.f32 %v1077_v1, %v1076_v9  ;;  %v1373_v1 = vld [vmem:[%s2589_s8] ss:$0 sm:$0xff] }
 0x3f8   :  { %v1071_v5 = vmul.f32 0.5, %v1070_v13  ;;  %v1079_v17 = vmul.f32 0.5, %v1078_v43 }
 0x3fa   :  { %v1080_v49 = vmul.f32 %v2409_v11, %v1071_v5  ;;  %v1081_v57 = vmul.f32 %v2411_v59, %v1079_v17 }
 0x3fc   :  { %v1082_v41 = vadd.f32 %v1081_v57, %v1080_v49 }
 0x3fe   :  { %v2460_v34 = vsub.f32 %v1062_v51, %v1082_v41 }
 0x400   :  { %v1084_v4 = vmul.f32 %v2460_v34, %v2460_v34 }
 0x402   :  { %v1085_v27 = vmul.f32 %v2409_v11, %v1084_v4  ;;  %v1093_v31 = vmul.f32 %v2411_v59, %v1084_v4 }
 0x404   :  { %v1086_v50 = vrot.slane %v1085_v27, 4  ;;  %v1094_v14 = vrot.slane %v1093_v31, 4 }
 0x406   :  { %v1087_v24 = vadd.f32 %v1086_v50, %v1085_v27  ;;  %v1095_v38 = vadd.f32 %v1094_v14, %v1093_v31  ;;  %v1267_v27 = vld [vmem:[%s2595_s13 + $0x78] sm:$0xff]  ;;  %v1266_v50 = vld [vmem:[%s2595_s13 + $0x70] sm:$0xff] }
 0x407   :  { %1272 = vmatpush.msrb.mxu2 %v1267_v27  ;;  %v1375_v27 = vld [vmem:[%s2591_s11] ss:$0 sm:$0xff] }
 0x408   :  { %v1088_v12 = vrot.slane %v1087_v24, 2  ;;  %v1096_v39 = vrot.slane %v1095_v38, 2 }
 0x409   :  { %1273 = vmatpush.msrb.mxu2 %v1266_v50 }
 0x40a   :  { %v1089_v19 = vadd.f32 %v1088_v12, %v1087_v24  ;;  %v1097_v63 = vadd.f32 %v1096_v39, %v1095_v38  ;;  %v1265_v24 = vld [vmem:[%s2595_s13 + $0x68] sm:$0xff]  ;;  %v1264_v12 = vld [vmem:[%s2595_s13 + $0x60] sm:$0xff] }
 0x40b   :  { %1274 = vmatpush.msrb.mxu2 %v1265_v24 }
 0x40c   :  { %v1090_v42 = vrot.slane %v1089_v19, 1  ;;  %v1098_v16 = vrot.slane %v1097_v63, 1 }
 0x40d   :  { %1275 = vmatpush.msrb.mxu2 %v1264_v12 }
 0x40e   :  { %v1091_v54 = vadd.f32 %v1090_v42, %v1089_v19  ;;  %v1099_v6 = vadd.f32 %v1098_v16, %v1097_v63  ;;  %v1263_v19 = vld [vmem:[%s2595_s13 + $0x58] sm:$0xff]  ;;  %v1261_v16 = vld [vmem:[%s2595_s13 + $0x48] sm:$0xff] }
 0x40f   :  { %1276 = vmatpush.msrb.mxu2 %v1263_v19 }
 0x410   :  { %v1092_v33 = vmul.f32 0.5, %v1091_v54  ;;  %v1100_v28 = vmul.f32 0.5, %v1099_v6  ;;  %v1260_v54 = vld [vmem:[%s2595_s13 + $0x40] sm:$0xff] }
 0x411   :  { %1277 = vmatpush.msrb.mxu2 %v1262_v15 }
 0x412   :  { %v1101_v60 = vadd.f32 1e-05, %v1092_v33  ;;  %v1113_v21 = vadd.f32 1e-05, %v1100_v28  ;;  %v1259_v33 = vld [vmem:[%s2595_s13 + $0x38] sm:$0xff] }
 0x413   :  { %1278 = vmatpush.msrb.mxu2 %v1261_v16 }
 0x414   :  { %1378 = vrsqrt.f32 %v1101_v60  ;;  %vm1108_vm6 = vweird.f32 %v1101_v60  ;;  %vm1120_vm8 = vweird.f32 %v1113_v21 }
 0x415   :  { %1380 = vrsqrt.f32 %v1113_v21  ;;  %1279 = vmatpush.msrb.mxu2 %v1260_v54 }
 0x417   :  { %1280 = vmatpush.msrb.mxu2 %v1259_v33 }
 0x41a   :  { %v1379_v29 = vpop.eup %1378 }
 0x41b   :  { %v1381_v2 = vpop.eup %1380  ;;  %v1103_v61 = vmul.f32 %v1379_v29, %v1101_v60  ;;  %vm1109_vm4 = vweird.f32 %v1379_v29  ;;  %v1258_v60 = vld [vmem:[%s2595_s13 + $0x30] sm:$0xff] }
 0x41c   :  { %v1115_v8 = vmul.f32 %v1381_v2, %v1113_v21  ;;  %vm1121_vm5 = vweird.f32 %v1381_v2  ;;  %vm1110_vm7 = vmor %vm1108_vm6, %vm1109_vm4  ;;  %1281 = vmatpush.msrb.mxu2 %v1258_v60 }
 0x41d   :  { %v1104_v20 = vmul.f32 %v1379_v29, %v1103_v61  ;;  %vm1122_vm9 = vmor %vm1120_vm8, %vm1121_vm5 }
 0x41e   :  { %v1116_v26 = vmul.f32 %v1381_v2, %v1115_v8 }
 0x41f   :  { %v1105_v51 = vmul.f32 0.5, %v1104_v20  ;;  %v1256_v20 = vld [vmem:[%s2595_s13 + $0x20] sm:$0xff] }
 0x420   :  { %v1117_v30 = vmul.f32 0.5, %v1116_v26 }
 0x421   :  { %v1106_v48 = vsub.f32 1.5, %v1105_v51 }
 0x422   :  { %v1118_v3 = vsub.f32 1.5, %v1117_v30  ;;  %v1255_v30 = vld [vmem:[%s2595_s13 + $0x18] sm:$0xff] }
 0x423   :  { %v1107_v62 = vmul.f32 %v1379_v29, %v1106_v48 }
 0x424   :  { %v1119_v37 = vmul.f32 %v1381_v2, %v1118_v3 }
 0x425   :  { %v1111_v55 = vsel %vm1110_vm7, %v1379_v29, %v1107_v62  ;;  %v1254_v62 = vld [vmem:[%s2595_s13 + $0x10] sm:$0xff] }
 0x426   :  { %v1112_v22 = vmul.f32 %v2409_v11, %v1111_v55  ;;  %v1123_v32 = vsel %vm1122_vm9, %v1381_v2, %v1119_v37  ;;  %v1257_v2 = vld [vmem:[%s2595_s13 + $0x28] sm:$0xff] }
 0x427   :  { %v1124_v46 = vmul.f32 %v2411_v59, %v1123_v32  ;;  %1282 = vmatpush.msrb.mxu2 %v1257_v2 }
 0x429   :  { %v1125_v9 = vadd.f32 %v1124_v46, %v1112_v22  ;;  %1283 = vmatpush.msrb.mxu2 %v1256_v20  ;;  %v1253_v22 = vld [vmem:[%s2595_s13 + $0x8] sm:$0xff] }
 0x42b   :  { %v1126_v53 = vmul.f32 %v1125_v9, %v2460_v34  ;;  %1284 = vmatpush.msrb.mxu2 %v1255_v30  ;;  %v1252_v9 = vld [vmem:[%s2595_s13] sm:$0xff] }
 0x42d   :  { %v1131_v25 = vmul.f32 %v1372_v45, %v1126_v53  ;;  %1285 = vmatpush.msrb.mxu2 %v1254_v62 }
 0x42f   :  { %v1136_v13 = vadd.f32 %v1373_v1, %v1131_v25  ;;  %1286 = vmatpush.msrb.mxu2 %v1253_v22 }
 0x431   :  { %v1137_v43 = vmax.f32 %v1136_v13, 0.0  ;;  %1287 = vmatpush.msrb.mxu2 %v1252_v9 }
 0x433   :  { %1174 = vmatmul.f32.vlgmr.msra.gmra.mxu3 %v1137_v43 }
 0x4b6   :  { %v1175_v5 = vpop.f32.mrf.mxu3 }
 0x4b7   :  { %v1176_v17 = vadd.f32 %v1374_v47, %v1175_v5 }
 0x4b9   :  { %v1178_v10 = vmul.f32 %v2409_v11, %v1176_v17  ;;  %v1186_v49 = vmul.f32 %v2411_v59, %v1176_v17 }
 0x4bb   :  { %v1179_v57 = vrot.slane %v1178_v10, 4  ;;  %v1187_v56 = vrot.slane %v1186_v49, 4 }
 0x4bd   :  { %v1180_v41 = vadd.f32 %v1179_v57, %v1178_v10  ;;  %v1188_v35 = vadd.f32 %v1187_v56, %v1186_v49 }
 0x4bf   :  { %v1181_v34 = vrot.slane %v1180_v41, 2  ;;  %v1189_v40 = vrot.slane %v1188_v35, 2 }
 0x4c1   :  { %v1182_v4 = vadd.f32 %v1181_v34, %v1180_v41  ;;  %v1190_v0 = vadd.f32 %v1189_v40, %v1188_v35 }
 0x4c3   :  { %v1183_v31 = vrot.slane %v1182_v4, 1  ;;  %v1191_v52 = vrot.slane %v1190_v0, 1 }
 0x4c5   :  { %v1184_v14 = vadd.f32 %v1183_v31, %v1182_v4  ;;  %v1192_v23 = vadd.f32 %v1191_v52, %v1190_v0  ;;  %v1376_v52 = vld [vmem:[%s2592_s12] ss:$0 sm:$0xff] }
 0x4c7   :  { %v1185_v38 = vmul.f32 0.5, %v1184_v14  ;;  %v1193_v7 = vmul.f32 0.5, %v1192_v23 }
 0x4c9   :  { %v1194_v39 = vmul.f32 %v2409_v11, %v1185_v38  ;;  %v1195_v18 = vmul.f32 %v2411_v59, %v1193_v7 }
 0x4cb   :  { %v1196_v63 = vadd.f32 %v1195_v18, %v1194_v39 }
 0x4cd   :  { %v2530_v42 = vsub.f32 %v1176_v17, %v1196_v63 }
 0x4cf   :  { %v1198_v58 = vmul.f32 %v2530_v42, %v2530_v42 }
 0x4d1   :  { %v1199_v6 = vmul.f32 %v2409_v11, %v1198_v58  ;;  %v1207_v44 = vmul.f32 %v2411_v59, %v1198_v58 }
 0x4d3   :  { %v1200_v28 = vrot.slane %v1199_v6, 4  ;;  %v1208_v36 = vrot.slane %v1207_v44, 4 }
 0x4d5   :  { %v1201_v21 = vadd.f32 %v1200_v28, %v1199_v6  ;;  %v1209_v29 = vadd.f32 %v1208_v36, %v1207_v44 }
 0x4d7   :  { %v1202_v61 = vrot.slane %v1201_v21, 2  ;;  %v1210_v8 = vrot.slane %v1209_v29, 2 }
 0x4d9   :  { %v1203_v26 = vadd.f32 %v1202_v61, %v1201_v21  ;;  %v1211_v51 = vadd.f32 %v1210_v8, %v1209_v29 }
 0x4db   :  { %v1204_v48 = vrot.slane %v1203_v26, 1  ;;  %v1212_v3 = vrot.slane %v1211_v51, 1 }
 0x4dd   :  { %v1205_v37 = vadd.f32 %v1204_v48, %v1203_v26  ;;  %v1213_v55 = vadd.f32 %v1212_v3, %v1211_v51 }
 0x4df   :  { %v1206_v32 = vmul.f32 0.5, %v1205_v37  ;;  %v1214_v46 = vmul.f32 0.5, %v1213_v55 }
 0x4e1   :  { %v1215_v45 = vadd.f32 1e-05, %v1206_v32  ;;  %v1227_v53 = vadd.f32 1e-05, %v1214_v46 }
 0x4e3   :  { %1382 = vrsqrt.f32 %v1215_v45  ;;  %vm1222_vm12 = vweird.f32 %v1215_v45  ;;  %vm1234_vm14 = vweird.f32 %v1227_v53 }
 0x4e4   :  { %1384 = vrsqrt.f32 %v1227_v53 }
 0x4e9   :  { %v1383_v1 = vpop.eup %1382 }
 0x4ea   :  { %v1385_v25 = vpop.eup %1384  ;;  %v1217_v13 = vmul.f32 %v1383_v1, %v1215_v45  ;;  %vm1223_vm10 = vweird.f32 %v1383_v1 }
 0x4eb   :  { %v1229_v43 = vmul.f32 %v1385_v25, %v1227_v53  ;;  %vm1235_vm11 = vweird.f32 %v1385_v25  ;;  %vm1224_vm13 = vmor %vm1222_vm12, %vm1223_vm10 }
 0x4ec   :  { %v1218_v47 = vmul.f32 %v1383_v1, %v1217_v13  ;;  %vm1236_vm15 = vmor %vm1234_vm14, %vm1235_vm11 }
 0x4ed   :  { %v1230_v5 = vmul.f32 %v1385_v25, %v1229_v43 }
 0x4ee   :  { %v1219_v17 = vmul.f32 0.5, %v1218_v47 }
 0x4ef   :  { %v1231_v10 = vmul.f32 0.5, %v1230_v5 }
 0x4f0   :  { %v1220_v49 = vsub.f32 1.5, %v1219_v17 }
 0x4f1   :  { %v1232_v57 = vsub.f32 1.5, %v1231_v10 }
 0x4f2   :  { %v1221_v56 = vmul.f32 %v1383_v1, %v1220_v49 }
 0x4f3   :  { %v1233_v41 = vmul.f32 %v1385_v25, %v1232_v57 }
 0x4f4   :  { %v1225_v35 = vsel %vm1224_vm13, %v1383_v1, %v1221_v56 }
 0x4f5   :  { %v1226_v34 = vmul.f32 %v2409_v11, %v1225_v35  ;;  %v1237_v40 = vsel %vm1236_vm15, %v1385_v25, %v1233_v41  ;;  %v1377_v11 = vld [vmem:[%s2594_s14] ss:$0 sm:$0xff] }
 0x4f6   :  { %v1238_v4 = vmul.f32 %v2411_v59, %v1237_v40 }
 0x4f8   :  { %v1239_v0 = vadd.f32 %v1238_v4, %v1226_v34 }
 0x4fa   :  { %v1240_v31 = vmul.f32 %v1239_v0, %v2530_v42 }
 0x4fc   :  { %v1245_v50 = vmul.f32 %v1375_v27, %v1240_v31 }
 0x4fe   :  { %v1250_v14 = vadd.f32 %v1376_v52, %v1245_v50 }
 0x500   :  { %v1251_v23 = vmax.f32 %v1250_v14, 0.0 }
 0x502   :  { %1288 = vmatmul.f32.vlgmr.msrb.gmra.mxu2 %v1251_v23 }
 0x585   :  { %v1289_v59 = vpop.f32.mrf.mxu2 }
 0x586   :  { %v1290_v24 = vadd.f32 %v1377_v11, %v1289_v59 }
 0x588   :  { %1292 = vst [vmem:[%s2596_s15] sm:$0xff] %v1290_v24 }

</bundles_post_ra>
